<compile_context>
chip_gen: v6e
topology: v6e:2x2x1
jax: 0.10.0
libtpu: 0.0.40
codegen_flags: <defaults>
</compile_context>

<pallas_src>
import functools

import jax
import jax.numpy as jnp
from jax.experimental import pallas as pl
from jax.experimental.pallas import tpu as pltpu


def _mfn_kernel(x_ref, w_f_ref, b_f_ref, w_t1_ref, b_t1_ref, w_t2_ref,
                b_t2_ref, w_h1_ref, b_h1_ref, w_h_ref, b_h_ref,
                w_out_ref, b_out_ref, o_ref, *,
                num_gate_layers, num_freq, small_in):
    x = x_ref[...]                                    # (bm, in_f) float32

    # --- input projections ------------------------------------------------
    if small_in:
        # Tiny-K matmul (e.g. K=2 coordinates): do it as broadcast FMAs on the
        # VPU instead of wasting an MXU push/pop round-trip.
        def in_proj(w_ref, b_ref):
            w = w_ref[...]                            # (in_f, N)
            acc = x[:, 0:1] * w[0:1, :]
            for k in range(1, x.shape[1]):
                acc = acc + x[:, k:k + 1] * w[k:k + 1, :]
            return acc + b_ref[...]
    else:
        def in_proj(w_ref, b_ref):
            return (jnp.dot(x, w_ref[...],
                            preferred_element_type=jnp.float32)
                    + b_ref[...])

    # --- Fourier feature encoder -------------------------------------------
    fx = in_proj(w_f_ref, b_f_ref)                    # (bm, F)
    ang = (2.0 * jnp.pi) * fx
    s = jnp.sin(ang)
    c = jnp.cos(ang)

    # Transform branches: sigmoid(concat([s, c]) @ W_T + b_T).  Computed as
    # two dots (sin rows / cos rows of W_T) to avoid a lane-dim concatenate —
    # mathematically identical.
    def transform(w_ref, b_ref):
        w = w_ref[...]                                # (2F, H)
        pre = (jnp.dot(s, w[:num_freq, :], preferred_element_type=jnp.float32)
               + jnp.dot(c, w[num_freq:, :], preferred_element_type=jnp.float32)
               + b_ref[...])
        return jax.nn.sigmoid(pre)

    T1 = transform(w_t1_ref, b_t1_ref)                # (bm, H)
    T2 = transform(w_t2_ref, b_t2_ref)                # (bm, H)

    # --- first hidden state -------------------------------------------------
    H = jax.nn.sigmoid(in_proj(w_h1_ref, b_h1_ref))   # (bm, H)

    # --- gated hidden layers ------------------------------------------------
    def gate_step(H, w, b):
        Z = jax.nn.sigmoid(jnp.dot(H, w, preferred_element_type=jnp.float32)
                           + b)
        return (1.0 - Z) * T1 + Z * T2

    if num_gate_layers <= 4:
        # Short nets: static unroll (LLO sees straight-line code).
        for l in range(num_gate_layers):
            H = gate_step(H, w_h_ref[l], b_h_ref[l])
    else:
        # Deep nets: visible loop with dynamic ref indexing bounds live ranges.
        def body(l, H):
            return gate_step(H, w_h_ref[l], b_h_ref[l])
        H = jax.lax.fori_loop(0, num_gate_layers, body, H)

    # --- output projection ----------------------------------------------------
    o_ref[...] = (jnp.dot(H, w_out_ref[...], preferred_element_type=jnp.float32)
                  + b_out_ref[...]).astype(o_ref.dtype)


def _choose_block_m(batch, requested):
    """MXU-friendly batch tile, shrunk so the grid has >= 2 steps (v7x TCs)."""
    bm = max(8, requested)
    while bm > 8 and pl.cdiv(batch, bm) < 2:
        bm //= 2
    return max(8, bm)


def modified_fourier_net_forward(x, params, *, block_m=256):
    """Fused Modified Fourier Net forward. x: (B, in_features) float32."""
    (w_f, b_f, w_t1, b_t1, w_t2, b_t2,
     w_h1, b_h1, w_h, b_h, w_out, b_out) = params

    B, in_f = x.shape
    num_freq = w_f.shape[1]
    hidden = w_h1.shape[1]
    out_f = w_out.shape[1]
    num_gate = w_h.shape[0]
    assert num_gate >= 1, "Modified_Fourier_Net expects num_hidden_layers >= 2"

    bm = _choose_block_m(B, block_m)
    grid_m = pl.cdiv(B, bm)
    b_pad = grid_m * bm
    if b_pad != B:
        x = jnp.pad(x, ((0, b_pad - B), (0, 0)))

    kernel = functools.partial(_mfn_kernel,
                               num_gate_layers=num_gate,
                               num_freq=num_freq,
                               small_in=(in_f <= 8))

    out = pl.pallas_call(
        kernel,
        out_shape=jax.ShapeDtypeStruct((b_pad, out_f), x.dtype),
        grid_spec=pltpu.PrefetchScalarGridSpec(
            num_scalar_prefetch=0,
            grid=(grid_m,),
            in_specs=[
                # batch tile of the input
                pl.BlockSpec((bm, in_f), lambda i: (i, 0)),
                # parameters: full arrays, constant block index across the grid
                pl.BlockSpec((in_f, num_freq), lambda i: (0, 0)),
                pl.BlockSpec((1, num_freq), lambda i: (0, 0)),
                pl.BlockSpec((2 * num_freq, hidden), lambda i: (0, 0)),
                pl.BlockSpec((1, hidden), lambda i: (0, 0)),
                pl.BlockSpec((2 * num_freq, hidden), lambda i: (0, 0)),
                pl.BlockSpec((1, hidden), lambda i: (0, 0)),
                pl.BlockSpec((in_f, hidden), lambda i: (0, 0)),
                pl.BlockSpec((1, hidden), lambda i: (0, 0)),
                pl.BlockSpec((num_gate, hidden, hidden), lambda i: (0, 0, 0)),
                pl.BlockSpec((num_gate, 1, hidden), lambda i: (0, 0, 0)),
                pl.BlockSpec((hidden, out_f), lambda i: (0, 0)),
                pl.BlockSpec((1, out_f), lambda i: (0, 0)),
            ],
            out_specs=pl.BlockSpec((bm, out_f), lambda i: (i, 0)),
        ),
        compiler_params=pltpu.CompilerParams(
            dimension_semantics=("parallel",),
            # Keep parameter + activation tiles inside v7x's 64 MiB VMEM while
            # leaving plenty of room on v5e/v6e.
            vmem_limit_bytes=64 * 1024 * 1024,
        ),
    )(x, w_f, b_f, w_t1, b_t1, w_t2, b_t2, w_h1, b_h1, w_h, b_h, w_out, b_out)

    return out[:B]


def init_mfn_params(key, in_features, out_features, hidden_features,
                    num_hidden_layers, num_freq):
    """PyTorch nn.Linear default init: U(-1/sqrt(fan_in), 1/sqrt(fan_in)).

    Weights stored transposed, i.e. (fan_in, fan_out).
    """
    num_gate = num_hidden_layers - 1
    ks = jax.random.split(key, 12)

    def lin(kw, kb, fan_in, fan_out, stack=None):
        bound = 1.0 / jnp.sqrt(fan_in)
        wshape = (fan_in, fan_out) if stack is None else (stack, fan_in, fan_out)
        bshape = (1, fan_out) if stack is None else (stack, 1, fan_out)
        w = jax.random.uniform(kw, wshape, jnp.float32, -bound, bound)
        b = jax.random.uniform(kb, bshape, jnp.float32, -bound, bound)
        return w, b

    w_f, b_f = lin(ks[0], ks[1], in_features, num_freq)
    w_t1, b_t1 = lin(ks[2], ks[3], 2 * num_freq, hidden_features)
    w_t2, b_t2 = lin(ks[4], ks[5], 2 * num_freq, hidden_features)
    w_h1, b_h1 = lin(ks[6], ks[7], in_features, hidden_features)
    w_h, b_h = lin(ks[8], ks[9], hidden_features, hidden_features,
                   stack=num_gate)
    w_out, b_out = lin(ks[10], ks[11], hidden_features, out_features)
    return (w_f, b_f, w_t1, b_t1, w_t2, b_t2,
            w_h1, b_h1, w_h, b_h, w_out, b_out)


def modified_fourier_net_reference(x, params):
    """Pure-JAX reference mirroring the PyTorch forward (for verification)."""
    (w_f, b_f, w_t1, b_t1, w_t2, b_t2,
     w_h1, b_h1, w_h, b_h, w_out, b_out) = params
    fx = x @ w_f + b_f
    encode = jnp.concatenate(
        [jnp.sin(2.0 * jnp.pi * fx), jnp.cos(2.0 * jnp.pi * fx)], axis=-1)
    T1 = jax.nn.sigmoid(encode @ w_t1 + b_t1)
    T2 = jax.nn.sigmoid(encode @ w_t2 + b_t2)
    H = jax.nn.sigmoid(x @ w_h1 + b_h1)
    for l in range(w_h.shape[0]):
        Z = jax.nn.sigmoid(H @ w_h[l] + b_h[l])
        H = (1.0 - Z) * T1 + Z * T2
    return H @ w_out + b_out


if __name__ == "__main__":
    # Small, coordinate-net-typical shapes: 2-D coords in, 3 channels out.
    in_features = 2
    out_features = 3
    hidden_features = 32
    num_hidden_layers = 3      # -> 2 gated layers
    num_freq = 32
    batch = 100                # not a multiple of the tile -> exercises padding

    # TODO(synk): adaptive_activation=True (learned scalar gate on the
    # pre-activation) is not implemented; default adaptive_activation=False.

    key = jax.random.PRNGKey(0)
    kx, kp = jax.random.split(key)
    x = jax.random.uniform(kx, (batch, in_features), jnp.float32, -1.0, 1.0)
    params = init_mfn_params(kp, in_features, out_features, hidden_features,
                             num_hidden_layers, num_freq)

    y = modified_fourier_net_forward(x, params, block_m=256)
    y = jax.block_until_ready(y)

    y_ref = modified_fourier_net_reference(x, params)
    assert y.shape == (batch, out_features)
    assert jnp.allclose(y, y_ref, atol=1e-3, rtol=1e-3), "mismatch vs reference"

    print("KERNEL_OK")
</pallas_src>

<mosaic_0001>
module attributes {stable_mosaic.version = 11 : i64} {
  func.func @_mfn_kernel(%arg0: i32, %arg1: memref<64x2xf32, #tpu.memory_space<vmem>>, %arg2: memref<2x32xf32, #tpu.memory_space<vmem>>, %arg3: memref<1x32xf32, #tpu.memory_space<vmem>>, %arg4: memref<64x32xf32, #tpu.memory_space<vmem>>, %arg5: memref<1x32xf32, #tpu.memory_space<vmem>>, %arg6: memref<64x32xf32, #tpu.memory_space<vmem>>, %arg7: memref<1x32xf32, #tpu.memory_space<vmem>>, %arg8: memref<2x32xf32, #tpu.memory_space<vmem>>, %arg9: memref<1x32xf32, #tpu.memory_space<vmem>>, %arg10: memref<2x32x32xf32, #tpu.memory_space<vmem>>, %arg11: memref<2x1x32xf32, #tpu.memory_space<vmem>>, %arg12: memref<32x3xf32, #tpu.memory_space<vmem>>, %arg13: memref<1x3xf32, #tpu.memory_space<vmem>>, %arg14: memref<64x3xf32, #tpu.memory_space<vmem>>) attributes {dimension_semantics = [#tpu.dimension_semantics<parallel>], iteration_bounds = array<i64: 2>, scalar_prefetch = 0 : i64, scratch_operands = 0 : i64, tpu.core_type = #tpu.core_type<tc>, window_params = [{transform_indices = @transform_0, window_bounds = array<i64: 64, 2>}, {pipeline_mode = #tpu.pipeline_mode<synchronous>, transform_indices = @transform_1, window_bounds = array<i64: 2, 32>}, {pipeline_mode = #tpu.pipeline_mode<synchronous>, transform_indices = @transform_2, window_bounds = array<i64: 1, 32>}, {pipeline_mode = #tpu.pipeline_mode<synchronous>, transform_indices = @transform_3, window_bounds = array<i64: 64, 32>}, {pipeline_mode = #tpu.pipeline_mode<synchronous>, transform_indices = @transform_4, window_bounds = array<i64: 1, 32>}, {pipeline_mode = #tpu.pipeline_mode<synchronous>, transform_indices = @transform_5, window_bounds = array<i64: 64, 32>}, {pipeline_mode = #tpu.pipeline_mode<synchronous>, transform_indices = @transform_6, window_bounds = array<i64: 1, 32>}, {pipeline_mode = #tpu.pipeline_mode<synchronous>, transform_indices = @transform_7, window_bounds = array<i64: 2, 32>}, {pipeline_mode = #tpu.pipeline_mode<synchronous>, transform_indices = @transform_8, window_bounds = array<i64: 1, 32>}, {pipeline_mode = #tpu.pipeline_mode<synchronous>, transform_indices = @transform_9, window_bounds = array<i64: 2, 32, 32>}, {pipeline_mode = #tpu.pipeline_mode<synchronous>, transform_indices = @transform_10, window_bounds = array<i64: 2, 1, 32>}, {pipeline_mode = #tpu.pipeline_mode<synchronous>, transform_indices = @transform_11, window_bounds = array<i64: 32, 3>}, {pipeline_mode = #tpu.pipeline_mode<synchronous>, transform_indices = @transform_12, window_bounds = array<i64: 1, 3>}, {transform_indices = @transform_13, window_bounds = array<i64: 64, 3>}]} {
    %c0 = arith.constant 0 : index
    %c0_0 = arith.constant 0 : index
    %0 = vector.load %arg1[%c0, %c0_0] : memref<64x2xf32, #tpu.memory_space<vmem>>, vector<64x2xf32>
    %c0_1 = arith.constant 0 : index
    %c0_2 = arith.constant 0 : index
    %1 = vector.load %arg2[%c0_1, %c0_2] : memref<2x32xf32, #tpu.memory_space<vmem>>, vector<2x32xf32>
    %2 = vector.extract_strided_slice %0 {offsets = [0, 0], sizes = [64, 1], strides = [1, 1]} : vector<64x2xf32> to vector<64x1xf32>
    %3 = vector.extract_strided_slice %1 {offsets = [0, 0], sizes = [1, 32], strides = [1, 1]} : vector<2x32xf32> to vector<1x32xf32>
    %4 = vector.broadcast %2 : vector<64x1xf32> to vector<64x32xf32>
    %5 = vector.broadcast %3 : vector<1x32xf32> to vector<64x32xf32>
    %6 = arith.mulf %4, %5 : vector<64x32xf32>
    %7 = vector.extract_strided_slice %0 {offsets = [0, 1], sizes = [64, 1], strides = [1, 1]} : vector<64x2xf32> to vector<64x1xf32>
    %8 = vector.extract_strided_slice %1 {offsets = [1, 0], sizes = [1, 32], strides = [1, 1]} : vector<2x32xf32> to vector<1x32xf32>
    %9 = vector.broadcast %7 : vector<64x1xf32> to vector<64x32xf32>
    %10 = vector.broadcast %8 : vector<1x32xf32> to vector<64x32xf32>
    %11 = arith.mulf %9, %10 : vector<64x32xf32>
    %12 = arith.addf %6, %11 : vector<64x32xf32>
    %c0_3 = arith.constant 0 : index
    %c0_4 = arith.constant 0 : index
    %13 = vector.load %arg3[%c0_3, %c0_4] : memref<1x32xf32, #tpu.memory_space<vmem>>, vector<1x32xf32>
    %14 = vector.broadcast %13 : vector<1x32xf32> to vector<64x32xf32>
    %15 = arith.addf %12, %14 : vector<64x32xf32>
    %cst = arith.constant 6.28318548 : f32
    %16 = vector.broadcast %cst : f32 to vector<64x32xf32>
    %17 = arith.mulf %16, %15 : vector<64x32xf32>
    %18 = math.sin %17 : vector<64x32xf32>
    %19 = math.cos %17 : vector<64x32xf32>
    %c0_5 = arith.constant 0 : index
    %c0_6 = arith.constant 0 : index
    %20 = vector.load %arg4[%c0_5, %c0_6] : memref<64x32xf32, #tpu.memory_space<vmem>>, vector<64x32xf32>
    %21 = vector.extract_strided_slice %20 {offsets = [0, 0], sizes = [32, 32], strides = [1, 1]} : vector<64x32xf32> to vector<32x32xf32>
    %cst_7 = arith.constant dense<0.000000e+00> : vector<64x32xf32>
    %22 = tpu.matmul %18, %21, %cst_7 {dimension_numbers = #tpu.dot_dimension_numbers<[1], [0], [0], [1], [0, 0, 1, 1], [], []>} : vector<64x32xf32>, vector<32x32xf32>, vector<64x32xf32> -> vector<64x32xf32>
    %23 = vector.extract_strided_slice %20 {offsets = [32, 0], sizes = [32, 32], strides = [1, 1]} : vector<64x32xf32> to vector<32x32xf32>
    %cst_8 = arith.constant dense<0.000000e+00> : vector<64x32xf32>
    %24 = tpu.matmul %19, %23, %cst_8 {dimension_numbers = #tpu.dot_dimension_numbers<[1], [0], [0], [1], [0, 0, 1, 1], [], []>} : vector<64x32xf32>, vector<32x32xf32>, vector<64x32xf32> -> vector<64x32xf32>
    %25 = arith.addf %22, %24 : vector<64x32xf32>
    %c0_9 = arith.constant 0 : index
    %c0_10 = arith.constant 0 : index
    %26 = vector.load %arg5[%c0_9, %c0_10] : memref<1x32xf32, #tpu.memory_space<vmem>>, vector<1x32xf32>
    %27 = vector.broadcast %26 : vector<1x32xf32> to vector<64x32xf32>
    %28 = arith.addf %25, %27 : vector<64x32xf32>
    %29 = arith.negf %28 : vector<64x32xf32>
    %30 = math.exp %29 : vector<64x32xf32>
    %cst_11 = arith.constant 1.000000e+00 : f32
    %31 = vector.broadcast %cst_11 : f32 to vector<64x32xf32>
    %32 = arith.addf %31, %30 : vector<64x32xf32>
    %33 = arith.divf %31, %32 : vector<64x32xf32>
    %c0_12 = arith.constant 0 : index
    %c0_13 = arith.constant 0 : index
    %34 = vector.load %arg6[%c0_12, %c0_13] : memref<64x32xf32, #tpu.memory_space<vmem>>, vector<64x32xf32>
    %35 = vector.extract_strided_slice %34 {offsets = [0, 0], sizes = [32, 32], strides = [1, 1]} : vector<64x32xf32> to vector<32x32xf32>
    %cst_14 = arith.constant dense<0.000000e+00> : vector<64x32xf32>
    %36 = tpu.matmul %18, %35, %cst_14 {dimension_numbers = #tpu.dot_dimension_numbers<[1], [0], [0], [1], [0, 0, 1, 1], [], []>} : vector<64x32xf32>, vector<32x32xf32>, vector<64x32xf32> -> vector<64x32xf32>
    %37 = vector.extract_strided_slice %34 {offsets = [32, 0], sizes = [32, 32], strides = [1, 1]} : vector<64x32xf32> to vector<32x32xf32>
    %cst_15 = arith.constant dense<0.000000e+00> : vector<64x32xf32>
    %38 = tpu.matmul %19, %37, %cst_15 {dimension_numbers = #tpu.dot_dimension_numbers<[1], [0], [0], [1], [0, 0, 1, 1], [], []>} : vector<64x32xf32>, vector<32x32xf32>, vector<64x32xf32> -> vector<64x32xf32>
    %39 = arith.addf %36, %38 : vector<64x32xf32>
    %c0_16 = arith.constant 0 : index
    %c0_17 = arith.constant 0 : index
    %40 = vector.load %arg7[%c0_16, %c0_17] : memref<1x32xf32, #tpu.memory_space<vmem>>, vector<1x32xf32>
    %41 = vector.broadcast %40 : vector<1x32xf32> to vector<64x32xf32>
    %42 = arith.addf %39, %41 : vector<64x32xf32>
    %43 = arith.negf %42 : vector<64x32xf32>
    %44 = math.exp %43 : vector<64x32xf32>
    %cst_18 = arith.constant 1.000000e+00 : f32
    %45 = vector.broadcast %cst_18 : f32 to vector<64x32xf32>
    %46 = arith.addf %45, %44 : vector<64x32xf32>
    %47 = arith.divf %45, %46 : vector<64x32xf32>
    %c0_19 = arith.constant 0 : index
    %c0_20 = arith.constant 0 : index
    %48 = vector.load %arg8[%c0_19, %c0_20] : memref<2x32xf32, #tpu.memory_space<vmem>>, vector<2x32xf32>
    %49 = vector.extract_strided_slice %0 {offsets = [0, 0], sizes = [64, 1], strides = [1, 1]} : vector<64x2xf32> to vector<64x1xf32>
    %50 = vector.extract_strided_slice %48 {offsets = [0, 0], sizes = [1, 32], strides = [1, 1]} : vector<2x32xf32> to vector<1x32xf32>
    %51 = vector.broadcast %49 : vector<64x1xf32> to vector<64x32xf32>
    %52 = vector.broadcast %50 : vector<1x32xf32> to vector<64x32xf32>
    %53 = arith.mulf %51, %52 : vector<64x32xf32>
    %54 = vector.extract_strided_slice %0 {offsets = [0, 1], sizes = [64, 1], strides = [1, 1]} : vector<64x2xf32> to vector<64x1xf32>
    %55 = vector.extract_strided_slice %48 {offsets = [1, 0], sizes = [1, 32], strides = [1, 1]} : vector<2x32xf32> to vector<1x32xf32>
    %56 = vector.broadcast %54 : vector<64x1xf32> to vector<64x32xf32>
    %57 = vector.broadcast %55 : vector<1x32xf32> to vector<64x32xf32>
    %58 = arith.mulf %56, %57 : vector<64x32xf32>
    %59 = arith.addf %53, %58 : vector<64x32xf32>
    %c0_21 = arith.constant 0 : index
    %c0_22 = arith.constant 0 : index
    %60 = vector.load %arg9[%c0_21, %c0_22] : memref<1x32xf32, #tpu.memory_space<vmem>>, vector<1x32xf32>
    %61 = vector.broadcast %60 : vector<1x32xf32> to vector<64x32xf32>
    %62 = arith.addf %59, %61 : vector<64x32xf32>
    %63 = arith.negf %62 : vector<64x32xf32>
    %64 = math.exp %63 : vector<64x32xf32>
    %cst_23 = arith.constant 1.000000e+00 : f32
    %65 = vector.broadcast %cst_23 : f32 to vector<64x32xf32>
    %66 = arith.addf %65, %64 : vector<64x32xf32>
    %67 = arith.divf %65, %66 : vector<64x32xf32>
    %c0_24 = arith.constant 0 : index
    %c0_25 = arith.constant 0 : index
    %c0_26 = arith.constant 0 : index
    %68 = vector.load %arg10[%c0_24, %c0_25, %c0_26] : memref<2x32x32xf32, #tpu.memory_space<vmem>>, vector<1x32x32xf32>
    %69 = vector.shape_cast %68 : vector<1x32x32xf32> to vector<32x32xf32>
    %c0_27 = arith.constant 0 : index
    %c0_28 = arith.constant 0 : index
    %c0_29 = arith.constant 0 : index
    %70 = vector.load %arg11[%c0_27, %c0_28, %c0_29] : memref<2x1x32xf32, #tpu.memory_space<vmem>>, vector<1x1x32xf32>
    %71 = vector.shape_cast %70 : vector<1x1x32xf32> to vector<1x32xf32>
    %cst_30 = arith.constant dense<0.000000e+00> : vector<64x32xf32>
    %72 = tpu.matmul %67, %69, %cst_30 {dimension_numbers = #tpu.dot_dimension_numbers<[1], [0], [0], [1], [0, 0, 1, 1], [], []>} : vector<64x32xf32>, vector<32x32xf32>, vector<64x32xf32> -> vector<64x32xf32>
    %73 = vector.broadcast %71 : vector<1x32xf32> to vector<64x32xf32>
    %74 = arith.addf %72, %73 : vector<64x32xf32>
    %75 = arith.negf %74 : vector<64x32xf32>
    %76 = math.exp %75 : vector<64x32xf32>
    %cst_31 = arith.constant 1.000000e+00 : f32
    %77 = vector.broadcast %cst_31 : f32 to vector<64x32xf32>
    %78 = arith.addf %77, %76 : vector<64x32xf32>
    %79 = arith.divf %77, %78 : vector<64x32xf32>
    %cst_32 = arith.constant 1.000000e+00 : f32
    %80 = vector.broadcast %cst_32 : f32 to vector<64x32xf32>
    %81 = arith.subf %80, %79 : vector<64x32xf32>
    %82 = arith.mulf %81, %33 : vector<64x32xf32>
    %83 = arith.mulf %79, %47 : vector<64x32xf32>
    %84 = arith.addf %82, %83 : vector<64x32xf32>
    %c1 = arith.constant 1 : index
    %c0_33 = arith.constant 0 : index
    %c0_34 = arith.constant 0 : index
    %85 = vector.load %arg10[%c1, %c0_33, %c0_34] : memref<2x32x32xf32, #tpu.memory_space<vmem>>, vector<1x32x32xf32>
    %86 = vector.shape_cast %85 : vector<1x32x32xf32> to vector<32x32xf32>
    %c1_35 = arith.constant 1 : index
    %c0_36 = arith.constant 0 : index
    %c0_37 = arith.constant 0 : index
    %87 = vector.load %arg11[%c1_35, %c0_36, %c0_37] : memref<2x1x32xf32, #tpu.memory_space<vmem>>, vector<1x1x32xf32>
    %88 = vector.shape_cast %87 : vector<1x1x32xf32> to vector<1x32xf32>
    %cst_38 = arith.constant dense<0.000000e+00> : vector<64x32xf32>
    %89 = tpu.matmul %84, %86, %cst_38 {dimension_numbers = #tpu.dot_dimension_numbers<[1], [0], [0], [1], [0, 0, 1, 1], [], []>} : vector<64x32xf32>, vector<32x32xf32>, vector<64x32xf32> -> vector<64x32xf32>
    %90 = vector.broadcast %88 : vector<1x32xf32> to vector<64x32xf32>
    %91 = arith.addf %89, %90 : vector<64x32xf32>
    %92 = arith.negf %91 : vector<64x32xf32>
    %93 = math.exp %92 : vector<64x32xf32>
    %cst_39 = arith.constant 1.000000e+00 : f32
    %94 = vector.broadcast %cst_39 : f32 to vector<64x32xf32>
    %95 = arith.addf %94, %93 : vector<64x32xf32>
    %96 = arith.divf %94, %95 : vector<64x32xf32>
    %cst_40 = arith.constant 1.000000e+00 : f32
    %97 = vector.broadcast %cst_40 : f32 to vector<64x32xf32>
    %98 = arith.subf %97, %96 : vector<64x32xf32>
    %99 = arith.mulf %98, %33 : vector<64x32xf32>
    %100 = arith.mulf %96, %47 : vector<64x32xf32>
    %101 = arith.addf %99, %100 : vector<64x32xf32>
    %c0_41 = arith.constant 0 : index
    %c0_42 = arith.constant 0 : index
    %102 = vector.load %arg12[%c0_41, %c0_42] : memref<32x3xf32, #tpu.memory_space<vmem>>, vector<32x3xf32>
    %cst_43 = arith.constant dense<0.000000e+00> : vector<64x3xf32>
    %103 = tpu.matmul %101, %102, %cst_43 {dimension_numbers = #tpu.dot_dimension_numbers<[1], [0], [0], [1], [0, 0, 1, 1], [], []>} : vector<64x32xf32>, vector<32x3xf32>, vector<64x3xf32> -> vector<64x3xf32>
    %c0_44 = arith.constant 0 : index
    %c0_45 = arith.constant 0 : index
    %104 = vector.load %arg13[%c0_44, %c0_45] : memref<1x3xf32, #tpu.memory_space<vmem>>, vector<1x3xf32>
    %105 = vector.broadcast %104 : vector<1x3xf32> to vector<64x3xf32>
    %106 = arith.addf %103, %105 : vector<64x3xf32>
    %c0_46 = arith.constant 0 : index
    %c0_47 = arith.constant 0 : index
    %107 = vector.load %arg14[%c0_46, %c0_47] : memref<64x3xf32, #tpu.memory_space<vmem>>, vector<64x3xf32>
    tpu.vector_store %arg14[%c0_46, %c0_47], %106 {strides = array<i32>} : memref<64x3xf32, #tpu.memory_space<vmem>>, vector<64x3xf32>,
    return
  }
  func.func @transform_0(%arg0: i32) -> (i32, i32) {
    %c0_i32 = arith.constant 0 : i32
    %c0_i32_0 = arith.constant 0 : i32
    return %arg0, %c0_i32 : i32, i32
  }
  func.func @transform_1(%arg0: i32) -> (i32, i32) {
    %c0_i32 = arith.constant 0 : i32
    %c0_i32_0 = arith.constant 0 : i32
    %c0_i32_1 = arith.constant 0 : i32
    return %c0_i32, %c0_i32_0 : i32, i32
  }
  func.func @transform_2(%arg0: i32) -> (i32, i32) {
    %c0_i32 = arith.constant 0 : i32
    %c0_i32_0 = arith.constant 0 : i32
    %c0_i32_1 = arith.constant 0 : i32
    return %c0_i32, %c0_i32_0 : i32, i32
  }
  func.func @transform_3(%arg0: i32) -> (i32, i32) {
    %c0_i32 = arith.constant 0 : i32
    %c0_i32_0 = arith.constant 0 : i32
    %c0_i32_1 = arith.constant 0 : i32
    return %c0_i32, %c0_i32_0 : i32, i32
  }
  func.func @transform_4(%arg0: i32) -> (i32, i32) {
    %c0_i32 = arith.constant 0 : i32
    %c0_i32_0 = arith.constant 0 : i32
    %c0_i32_1 = arith.constant 0 : i32
    return %c0_i32, %c0_i32_0 : i32, i32
  }
  func.func @transform_5(%arg0: i32) -> (i32, i32) {
    %c0_i32 = arith.constant 0 : i32
    %c0_i32_0 = arith.constant 0 : i32
    %c0_i32_1 = arith.constant 0 : i32
    return %c0_i32, %c0_i32_0 : i32, i32
  }
  func.func @transform_6(%arg0: i32) -> (i32, i32) {
    %c0_i32 = arith.constant 0 : i32
    %c0_i32_0 = arith.constant 0 : i32
    %c0_i32_1 = arith.constant 0 : i32
    return %c0_i32, %c0_i32_0 : i32, i32
  }
  func.func @transform_7(%arg0: i32) -> (i32, i32) {
    %c0_i32 = arith.constant 0 : i32
    %c0_i32_0 = arith.constant 0 : i32
    %c0_i32_1 = arith.constant 0 : i32
    return %c0_i32, %c0_i32_0 : i32, i32
  }
  func.func @transform_8(%arg0: i32) -> (i32, i32) {
    %c0_i32 = arith.constant 0 : i32
    %c0_i32_0 = arith.constant 0 : i32
    %c0_i32_1 = arith.constant 0 : i32
    return %c0_i32, %c0_i32_0 : i32, i32
  }
  func.func @transform_9(%arg0: i32) -> (i32, i32, i32) {
    %c0_i32 = arith.constant 0 : i32
    %c0_i32_0 = arith.constant 0 : i32
    %c0_i32_1 = arith.constant 0 : i32
    %c0_i32_2 = arith.constant 0 : i32
    return %c0_i32, %c0_i32_0, %c0_i32_1 : i32, i32, i32
  }
  func.func @transform_10(%arg0: i32) -> (i32, i32, i32) {
    %c0_i32 = arith.constant 0 : i32
    %c0_i32_0 = arith.constant 0 : i32
    %c0_i32_1 = arith.constant 0 : i32
    %c0_i32_2 = arith.constant 0 : i32
    return %c0_i32, %c0_i32_0, %c0_i32_1 : i32, i32, i32
  }
  func.func @transform_11(%arg0: i32) -> (i32, i32) {
    %c0_i32 = arith.constant 0 : i32
    %c0_i32_0 = arith.constant 0 : i32
    %c0_i32_1 = arith.constant 0 : i32
    return %c0_i32, %c0_i32_0 : i32, i32
  }
  func.func @transform_12(%arg0: i32) -> (i32, i32) {
    %c0_i32 = arith.constant 0 : i32
    %c0_i32_0 = arith.constant 0 : i32
    %c0_i32_1 = arith.constant 0 : i32
    return %c0_i32, %c0_i32_0 : i32, i32
  }
  func.func @transform_13(%arg0: i32) -> (i32, i32) {
    %c0_i32 = arith.constant 0 : i32
    %c0_i32_0 = arith.constant 0 : i32
    return %arg0, %c0_i32 : i32, i32
  }
}

</mosaic_0001>

<bundles_post_ra>
// kernel: tpu_custom_call.1
= control target key start
LH: loop header
LB: loop body
LE: loop exit
PB: predicated region body
PF: predicated region fallthrough
CT: control target
= control target key end

     0   :  { %s4341_s25 = smov 0   ;;  %s5771_s0 = inlined_call_operand.vmem [shape: f32[128,2], index: 0, kind: input, shape index: {}]   ;;  %s5772_s1 = inlined_call_operand.vmem [shape: f32[2,32], index: 1, kind: input, shape index: {}]   ;;  %s5773_s2 = inlined_call_operand.vmem [shape: f32[1,32], index: 2, kind: input, shape index: {}]   ;;  %s5774_s3 = inlined_call_operand.vmem [shape: f32[64,32], index: 3, kind: input, shape index: {}]   ;;  %s5775_s4 = inlined_call_operand.vmem [shape: f32[1,32], index: 4, kind: input, shape index: {}]   ;;  %s5776_s5 = inlined_call_operand.vmem [shape: f32[64,32], index: 5, kind: input, shape index: {}]   ;;  %s5777_s6 = inlined_call_operand.vmem [shape: f32[1,32], index: 6, kind: input, shape index: {}]   ;;  %s5778_s7 = inlined_call_operand.vmem [shape: f32[2,32], index: 7, kind: input, shape index: {}]   ;;  %s5779_s8 = inlined_call_operand.vmem [shape: f32[1,32], index: 8, kind: input, shape index: {}]   ;;  %s5780_s9 = inlined_call_operand.vmem [shape: f32[2,32,32], index: 9, kind: input, shape index: {}]   ;;  %s5781_s10 = inlined_call_operand.vmem [shape: f32[2,1,32], index: 10, kind: input, shape index: {}]   ;;  %s5782_s11 = inlined_call_operand.vmem [shape: f32[32,3], index: 11, kind: input, shape index: {}]   ;;  %s5783_s12 = inlined_call_operand.vmem [shape: f32[1,3], index: 12, kind: input, shape index: {}]   ;;  %s5784_s13 = inlined_call_operand.vmem [shape: f32[128,3], index: 13, kind: output, shape index: {}]  }
   0x1 LB: > { %s3590_s26 = sadd.s32 4294967295, %s4261_s25   ;;  %p3594_p0 = scmp.ge.s32.totalorder %s4261_s25, 1  ;;  %s4261_s25 = sphi %s4341_s25, %s23_s25  }
   0x2   : > { %p388_p1 = scmp.lt.s32.totalorder %s4261_s25, 3 }
   0x4   : > { %p389_p2 = pnand %p3594_p0, %p388_p1 }
   0x5   : > { %s3595_s27 = sshll.u32 (!%p389_p2), %s3590_s26, 3 }
   0x6   : > { %392 = sbr.rel (%p389_p2) target bundleno = 1114 (0x45a), region = 72  ;;  %p433_p3 = scmp.lt.s32.totalorder (!%p389_p2), %s3595_s27, 15 }
   0xb   : > { %v4263_v0 = vmov 1   ;;  %v4264_v1 = vmov 0   ;;  %s5827_s27 = smov (!%p433_p3, %s3595_s27), 15  ;;  %v493_v10 = vlaneseq  ;;  %v452_v14 = vld [vmem:[%s5772_s1] sm:$0x3]  ;;  %v2243_v38 = vld [vmem:[%s5774_s3 + $0x38] sm:$0xff] }
   0xc   : > { %4054 = vset.pattern.permute.xlu1 %v4263_v0  ;;  %4053 = vset.pattern.permute.xlu0 %v4264_v1  ;;  %s3596_s28 = sshll.u32 %s5827_s27, 3  ;;  %v2847_v15 = vld [vmem:[%s5778_s7] sm:$0x3]  ;;  %v2242_v39 = vld [vmem:[%s5774_s3 + $0x30] sm:$0xff]  ;;  %v2241_v43 = vld [vmem:[%s5774_s3 + $0x28] sm:$0xff] }
   0xd   : > { %s436_s14 = scalar_lea.vmem %s5771_s0, %s3596_s28  ;;  %v494_v11 = vshrl.u32 %v493_v10, 7  ;;  %v4380_v30 = vld [vmem:[%s5773_s2] ss:$0 sm:$0xff]  ;;  %3997 = vmatprep.subr.mxu1 %v2243_v38  ;;  %3857 = vmatprep.subr.mxu0 %v2243_v38  ;;  %s442_s23 = scalar_lea.vmem %s5784_s13, %s3596_s28 }
   0xe   : > { %v444_v2 = vld [vmem:[%s436_s14] sm:$0xff]  ;;  %v445_v4 = vld [vmem:[%s436_s14 + $0x8] sm:$0xff]  ;;  %v450_v6 = vld [vmem:[%s436_s14 + $0x30] sm:$0xff]  ;;  %4001 = vmatpush3.msra.mxu1 %v2243_v38  ;;  %3858 = vmatpush3.msra.mxu0 %v2243_v38 }
   0xf   : > { %506 = vperm.xlu1 %4054, %v444_v2   ;;  %455 = vperm.xlu0 %4053, %v444_v2   ;;  %v448_v3 = vld [vmem:[%s436_s14 + $0x20] sm:$0xff]  ;;  %v449_v5 = vld [vmem:[%s436_s14 + $0x28] sm:$0xff]  ;;  %v447_v7 = vld [vmem:[%s436_s14 + $0x18] sm:$0xff]  ;;  %v539_v12 = vsub.s32 1, %v494_v11  ;;  %v495_v13 = vsub.s32 0, %v494_v11 }
  0x10   : > { %v446_v8 = vld [vmem:[%s436_s14 + $0x10] sm:$0xff]  ;;  %v451_v9 = vld [vmem:[%s436_s14 + $0x38] sm:$0xff]  ;;  %3998 = vmatprep.subr.mxu1 %v2242_v39  ;;  %v2240_v48 = vld [vmem:[%s5774_s3 + $0x20] sm:$0xff]  ;;  %3859 = vmatprep.subr.mxu0 %v2242_v39 }
  0x11   : > { %v4363_v16 = vrot.slane %v452_v14, %v539_v12  ;;  %v4365_v17 = vrot.slane %v2847_v15, %v539_v12  ;;  %v4367_v18 = vrot.slane %v452_v14, %v495_v13  ;;  %v4369_v19 = vrot.slane %v2847_v15, %v495_v13  ;;  %4002 = vmatpush3.msra.mxu1 %v2242_v39 }
  0x12   : > { %3999 = vmatprep.subr.mxu1 %v2241_v43  ;;  %3860 = vmatpush3.msra.mxu0 %v2242_v39 }
  0x13   : > { %522 = vperm.xlu1 %4054, %v448_v3   ;;  %475 = vperm.xlu0 %4053, %v448_v3  }
  0x14   : > { %4003 = vmatpush3.msra.mxu1 %v2241_v43  ;;  %3861 = vmatprep.subr.mxu0 %v2241_v43 }
  0x15   : > { %4000 = vmatprep.subr.mxu1 %v2240_v48  ;;  %3862 = vmatpush3.msra.mxu0 %v2241_v43 }
  0x16   : > { %4004 = vmatpush3.msra.mxu1 %v2240_v48  ;;  %3863 = vmatprep.subr.mxu0 %v2240_v48 }
  0x17   : > { %4055 = vset.pattern.permute.xlu1 %v4264_v1  ;;  %460 = vperm.xlu0 %4053, %v445_v4  }
  0x18   : > { %480 = vperm.xlu1 %4055, %v449_v5   ;;  %3864 = vmatpush3.msra.mxu0 %v2240_v48 }
  0x1b   : > { %485 = vperm.xlu0 %4053, %v450_v6  }
  0x1c   : > { %4056 = vset.pattern.permute.xlu1 %v4263_v0 }
  0x1d   : > { %526 = vperm.xlu1 %4056, %v449_v5  }
  0x1f   : > { %470 = vperm.xlu0 %4053, %v447_v7  }
  0x21   : > { %4057 = vset.pattern.permute.xlu1 %v4264_v1 }
  0x22   : > { %465 = vperm.xlu1 %4057, %v446_v8  }
  0x23   : > { %4059 = vset.pattern.permute.xlu0 %v4263_v0 }
  0x24   : > { %510 = vperm.xlu0 %4059, %v445_v4  }
  0x26   : > { %4058 = vset.pattern.permute.xlu1 %v4263_v0 }
  0x27   : > { %514 = vperm.xlu1 %4058, %v446_v8  }
  0x28   : > { %518 = vperm.xlu0 %4059, %v447_v7  }
  0x2b   : > { %530 = vperm.xlu1 %4058, %v450_v6  }
  0x2f   : > { %4060 = vset.pattern.permute.xlu1 %v4264_v1 }
  0x30   : > { %490 = vperm.xlu1 %4060, %v451_v9  }
  0x34   : > { %4061 = vset.pattern.permute.xlu1 %v4263_v0 }
  0x35   : > { %534 = vperm.xlu1 %4061, %v451_v9  }
  0x8a   : > { %v507_v20 = vpop.permute.xlu1 %506  ;;  %v456_v21 = vpop.permute.xlu0 %455 }
  0x8b   : > { %v541_v22 = vmul.f32 %v4363_v16, %v507_v20  ;;  %v2864_v23 = vmul.f32 %v4365_v17, %v507_v20  ;;  %v497_v24 = vmul.f32 %v4367_v18, %v456_v21  ;;  %v2852_v25 = vmul.f32 %v4369_v19, %v456_v21 }
  0x8d   : > { %v4375_v26 = vadd.f32 %v2864_v23, %v2852_v25  ;;  %v549_v27 = vadd.f32 %v541_v22, %v497_v24 }
  0x8e   : > { %v523_v28 = vpop.permute.xlu1 %522  ;;  %v476_v29 = vpop.permute.xlu0 %475 }
  0x8f   : > { %v2868_v31 = vmul.f32 %v4365_v17, %v523_v28  ;;  %v2856_v32 = vmul.f32 %v4369_v19, %v476_v29  ;;  %v564_v33 = vadd.f32 %v4380_v30, %v549_v27  ;;  %v545_v40 = vmul.f32 %v4363_v16, %v523_v28 }
  0x90   : > { %v501_v41 = vmul.f32 %v4367_v18, %v476_v29 }
  0x91   : > { %v4385_v34 = vadd.f32 %v2868_v31, %v2856_v32  ;;  %v4400_v44 = vmul.f32 6.2831855, %v564_v33 }
  0x92   : > { %v461_v35 = vpop.permute.xlu0 %460  ;;  %v553_v49 = vadd.f32 %v545_v40, %v501_v41 }
  0x93   : > { %v2853_v36 = vmul.f32 %v4369_v19, %v461_v35  ;;  %v481_v37 = vpop.permute.xlu1 %480  ;;  %v583_v52 = vand.u32 2139095040, %v4400_v44  ;;  %v498_v1 = vmul.f32 %v4367_v18, %v461_v35 }
  0x94   : > { %v2857_v42 = vmul.f32 %v4369_v19, %v481_v37  ;;  %v568_v56 = vadd.f32 %v4380_v30, %v553_v49  ;;  %v502_v58 = vmul.f32 %v4367_v18, %v481_v37 }
  0x95   : > { %v584_v60 = vshrl.u32 %v583_v52, 23 }
  0x96   : > { %v486_v45 = vpop.permute.xlu0 %485  ;;  %v4418_v0 = vmul.f32 6.2831855, %v568_v56 }
  0x97   : > { %v503_v46 = vmul.f32 %v4367_v18, %v486_v45  ;;  %v4404_v47 = vmul.f32 %v4369_v19, %v486_v45  ;;  %v3600_v4 = vadd.s32 4294967169, %v584_v60 }
  0x98   : > { %v527_v50 = vpop.permute.xlu1 %526  ;;  %v999_v13 = vand.u32 2139095040, %v4418_v0 }
  0x99   : > { %v2869_v51 = vmul.f32 %v4365_v17, %v527_v50  ;;  %v546_v54 = vmul.f32 %v4363_v16, %v527_v50  ;;  %v590_v23 = vadd.s32 1, %v3600_v4  ;;  %v996_v4 = vand.u32 2147483647, %v4418_v0 }
  0x9a   : > { %v471_v53 = vpop.permute.xlu0 %470  ;;  %v1000_v31 = vshrl.u32 %v999_v13, 23 }
  0x9b   : > { %v4412_v55 = vadd.f32 %v2869_v51, %v2857_v42  ;;  %v2855_v57 = vmul.f32 %v4369_v19, %v471_v53  ;;  %v554_v62 = vadd.f32 %v546_v54, %v502_v58  ;;  %v500_v14 = vmul.f32 %v4367_v18, %v471_v53 }
  0x9c   : > { %vm591_vm0 = vcmp.gt.s32.totalorder %v590_v23, 0  ;;  %v3616_v38 = vadd.s32 4294967169, %v1000_v31  ;;  %v580_v53 = vand.u32 2147483647, %v4400_v44 }
  0x9d   : > { %v466_v59 = vpop.permute.xlu1 %465  ;;  %v569_v8 = vadd.f32 %v4380_v30, %v554_v62  ;;  %v592_v40 = vsel %vm591_vm0, %v590_v23, 0  ;;  %vm582_vm0 = vcmp.lt.s32.totalorder %v4400_v44, 0 }
  0x9e   : > { %v2854_v61 = vmul.f32 %v4369_v19, %v466_v59  ;;  %v499_v9 = vmul.f32 %v4367_v18, %v466_v59  ;;  %v594_v50 = vand.u32 31, %v592_v40  ;;  %v1006_v51 = vadd.s32 1, %v3616_v38 }
  0x9f   : > { %v511_v63 = vpop.permute.xlu0 %510  ;;  %v4435_v27 = vmul.f32 6.2831855, %v569_v8  ;;  %v5790_v8 = vmov 2131351028  }
  0xa0   : > { %v542_v2 = vmul.f32 %v4363_v16, %v511_v63  ;;  %v2865_v3 = vmul.f32 %v4365_v17, %v511_v63  ;;  %v595_v58 = vsub.s32 32, %v594_v50  ;;  %vm1007_vm1 = vcmp.gt.s32.totalorder %v1006_v51, 0 }
  0xa1   : > { %v1008_v62 = vsel %vm1007_vm1, %v1006_v51, 0  ;;  %vm4630_vm1 = vcmp.le.f32.partialorder %v580_v53, 0.7853982 }
  0xa2   : > { %v550_v5 = vadd.f32 %v542_v2, %v498_v1  ;;  %v4423_v6 = vadd.f32 %v2865_v3, %v2853_v36  ;;  %v515_v7 = vpop.permute.xlu1 %514  ;;  %v1103_v36 = vand.u32 2139095040, %v4435_v27  ;;  %v5799_v3 = vmov 2475754826  }
  0xa3   : > { %v543_v10 = vmul.f32 %v4363_v16, %v515_v7  ;;  %v2866_v11 = vmul.f32 %v4365_v17, %v515_v7  ;;  %v519_v12 = vpop.permute.xlu0 %518 }
  0xa4   : > { %v544_v15 = vmul.f32 %v4363_v16, %v519_v12  ;;  %v2867_v22 = vmul.f32 %v4365_v17, %v519_v12  ;;  %v565_v35 = vadd.f32 %v4380_v30, %v550_v5  ;;  %v1104_v45 = vshrl.u32 %v1103_v36, 23 }
  0xa5   : > { %v551_v20 = vadd.f32 %v543_v10, %v499_v9  ;;  %v4432_v21 = vadd.f32 %v2866_v11, %v2854_v61  ;;  %v5797_v5 = vmov 683565275   ;;  %v601_v9 = vshrl.u32 %v5790_v8, %v595_v58 }
  0xa6   : > { %v552_v24 = vadd.f32 %v544_v15, %v500_v14  ;;  %v531_v25 = vpop.permute.xlu1 %530  ;;  %v4438_v29 = vadd.f32 %v2867_v22, %v2855_v57  ;;  %v4445_v42 = vmul.f32 6.2831855, %v565_v35  ;;  %v3620_v54 = vadd.s32 4294967169, %v1104_v45 }
  0xa7   : > { %v566_v28 = vadd.f32 %v4380_v30, %v551_v20  ;;  %v547_v33 = vmul.f32 %v4363_v16, %v531_v25  ;;  %v2870_v41 = vmul.f32 %v4365_v17, %v531_v25  ;;  %v597_v7 = vshll.u32 %v5797_v5, %v594_v50 }
  0xa8   : > { %v567_v32 = vadd.f32 %v4380_v30, %v552_v24  ;;  %v1110_v63 = vadd.s32 1, %v3620_v54  ;;  %v4474_v10 = vand.u32 31, %v1008_v62  ;;  %v603_v14 = vshll.u32 %v5790_v8, %v594_v50 }
  0xa9   : > { %v555_v39 = vadd.f32 %v547_v33, %v503_v46  ;;  %v4451_v48 = vadd.f32 %v2870_v41, %v4404_v47  ;;  %v687_v46 = vand.u32 2139095040, %v4445_v42  ;;  %v587_v47 = vand.u32 8388607, %v580_v53 }
  0xaa   : > { %v4461_v60 = vmul.f32 6.2831855, %v566_v28  ;;  %v4463_v1 = vmul.f32 6.2831855, %v567_v32  ;;  %vm1111_vm2 = vcmp.gt.s32.totalorder %v1110_v63, 0  ;;  %v593_v22 = vshrl.u32 %v592_v40, 5 }
  0xab   : > { %v491_v37 = vpop.permute.xlu1 %490  ;;  %v4448_v43 = vadd.f32 %v4380_v30, %v555_v39  ;;  %v5788_v15 = vmov 2102212464   ;;  %v4485_v25 = vand.u32 8388607, %v996_v4  ;;  %v4269_v33 = vmov 920167782  }
  0xac   : > { %v2859_v49 = vmul.f32 %v4369_v19, %v491_v37  ;;  %v504_v59 = vmul.f32 %v4367_v18, %v491_v37  ;;  %v688_v19 = vshrl.u32 %v687_v46, 23  ;;  %v598_v18 = vshrl.u32 %v5799_v3, %v595_v58 }
  0xad   : > { %v791_v12 = vand.u32 2139095040, %v4461_v60  ;;  %v895_v13 = vand.u32 2139095040, %v4463_v1  ;;  %v604_v20 = vshrl.u32 %v5788_v15, %v595_v58  ;;  %v606_v32 = vshll.u32 %v5788_v15, %v594_v50 }
  0xae   : > { %v3604_v11 = vadd.s32 4294967169, %v688_v19  ;;  %v599_v23 = vor.u32 %v598_v18, %v597_v7  ;;  %v607_v35 = vshrl.u32 %v4269_v33, %v595_v58  ;;  %v4490_v36 = vsub.s32 32, %v4474_v10 }
  0xaf   : > { %v605_v31 = vor.u32 %v604_v20, %v603_v14  ;;  %v4492_v37 = vsel %vm1111_vm2, %v1110_v63, 0  ;;  %v792_v39 = vshrl.u32 %v791_v12, 23  ;;  %v896_v40 = vshrl.u32 %v895_v13, 23 }
  0xb0   : > { %v535_v52 = vpop.permute.xlu1 %534  ;;  %v694_v38 = vadd.s32 1, %v3604_v11  ;;  %v608_v41 = vor.u32 %v607_v35, %v606_v32  ;;  %v609_v45 = vshll.u32 %v4269_v33, %v594_v50  ;;  %vm612_vm3 = vcmp.lt.s32.totalorder %v593_v22, 1 }
  0xb1   : > { %v548_v56 = vmul.f32 %v4363_v16, %v535_v52  ;;  %v2871_v57 = vmul.f32 %v4365_v17, %v535_v52  ;;  %v588_v17 = vor.u32 8388608, %v587_v47  ;;  %v596_v52 = vshrl.u32 %v5797_v5, %v595_v58 }
  0xb2   : > { %vm614_vm4 = vcmp.lt.s32.totalorder %v593_v22, 3  ;;  %vm615_vm5 = vcmp.lt.s32.totalorder %v593_v22, 4  ;;  %vm613_vm6 = vcmp.lt.s32.totalorder %v593_v22, 2  ;;  %vm695_vm7 = vcmp.gt.s32.totalorder %v694_v38, 0 }
  0xb3   : > { %v556_v61 = vadd.f32 %v548_v56, %v504_v59  ;;  %v4465_v2 = vadd.f32 %v2871_v57, %v2859_v49  ;;  %v4481_v24 = vshll.u32 %v588_v17, 8  ;;  %v5786_v49 = vmov 1326507024  }
  0xb4   : > { %v610_v51 = vshrl.u32 %v5786_v49, %v595_v58  ;;  %v617_v54 = vsel %vm615_vm5, %v605_v31, 2102212464  ;;  %v621_v57 = vsel %vm615_vm5, %v608_v41, 920167782  ;;  %v3608_v59 = vadd.s32 4294967169, %v792_v39  ;;  %v2573_v58 = vld [vmem:[%s5776_s5 + $0x38] sm:$0xff] }
  0xb5   : > { %v4468_v16 = vadd.f32 %v4380_v30, %v556_v61  ;;  %v600_v30 = vshll.u32 %v5799_v3, %v594_v50  ;;  %v622_v47 = vsel %vm614_vm4, %v605_v31, %v621_v57  ;;  %v616_v61 = vsel %vm612_vm3, %v596_v52, %v599_v23  ;;  %3897 = vmatprep.subr.mxu0 %v2573_v58 }
  0xb6   : > { %v611_v46 = vor.u32 %v610_v51, %v609_v45  ;;  %v4509_v11 = vshrl.u32 %v1008_v62, 5  ;;  %v4512_v12 = vand.u32 31, %v4492_v37  ;;  %v1004_v13 = vor.u32 8388608, %v4485_v25 }
  0xb7   : > { %v602_v28 = vor.u32 %v601_v9, %v600_v30  ;;  %v3612_v14 = vadd.s32 4294967169, %v896_v40  ;;  %v4517_v20 = vmul.f32 6.2831855, %v4448_v43  ;;  %v798_v62 = vadd.s32 1, %v3608_v59 }
  0xb8   : > { %v625_v63 = vsel %vm615_vm5, %v611_v46, 1326507024  ;;  %v1014_v35 = vshrl.u32 %v5799_v3, %v4490_v36  ;;  %v1013_v25 = vshll.u32 %v5797_v5, %v4474_v10  ;;  %v1016_v43 = vshll.u32 %v5799_v3, %v4474_v10 }
  0xb9   : > { %v620_v56 = vsel %vm612_vm3, %v599_v23, %v602_v28  ;;  %v624_v19 = vsel %vm612_vm3, %v602_v28, %v605_v31  ;;  %v618_v17 = vsel %vm614_vm4, %v602_v28, %v617_v54  ;;  %v626_v18 = vsel %vm614_vm4, %v608_v41, %v625_v63 }
  0xba   : > { %v623_v50 = vsel %vm613_vm6, %v620_v56, %v622_v47  ;;  %v627_v30 = vsel %vm613_vm6, %v624_v19, %v626_v18  ;;  %v4524_v31 = vsel %vm695_vm7, %v694_v38, 0  ;;  %v619_v32 = vsel %vm613_vm6, %v616_v61, %v618_v17 }
  0xbb   : > { %v4505_v7 = vmul.u32.u64.low %v4481_v24, %v623_v50  ;;  %v4506_v9 = vmul.u32.u64.high %v4481_v24, %v623_v50, %v4505_v7  ;;  %v4520_v23 = vmul.u32.u64.low %v4481_v24, %v627_v30  ;;  %v4521_v28 = vmul.u32.u64.high %v4481_v24, %v627_v30, %v4520_v23 }
  0xbc   : > { %v1017_v40 = vshrl.u32 %v5790_v8, %v4490_v36  ;;  %v1019_v38 = vshll.u32 %v5790_v8, %v4474_v10  ;;  %v1020_v22 = vshrl.u32 %v5788_v15, %v4490_v36  ;;  %v1022_v41 = vshll.u32 %v5788_v15, %v4474_v10 }
  0xbd   : > { %v638_v39 = vadd.s32 1, %v4506_v9  ;;  %v1023_v45 = vshrl.u32 %v4269_v33, %v4490_v36  ;;  %v635_v51 = vmul.u32 %v4481_v24, %v619_v32  ;;  %vm637_vm8 = vc.u32 %v4521_v28, %v4505_v7 }
  0xbe   : > { %v1015_v52 = vor.u32 %v1014_v35, %v1013_v25  ;;  %v1018_v46 = vor.u32 %v1017_v40, %v1016_v43  ;;  %v4548_v54 = vand.u32 31, %v4524_v31  ;;  %v1021_v57 = vor.u32 %v1020_v22, %v1019_v38 }
  0xbf   : > { %v639_v56 = vsel %vm637_vm8, %v638_v39, %v4506_v9  ;;  %v1024_v59 = vor.u32 %v1023_v45, %v1022_v41  ;;  %v902_v47 = vadd.s32 1, %v3612_v14  ;;  %v1025_v61 = vshll.u32 %v4269_v33, %v4474_v10 }
  0xc0   : > { %v640_v19 = vadd.s32 %v639_v56, %v635_v51  ;;  %v1026_v24 = vshrl.u32 %v5786_v49, %v4490_v36  ;;  %vm799_vm9 = vcmp.gt.s32.totalorder %v798_v62, 0  ;;  %v1207_v50 = vand.u32 2139095040, %v4517_v20 }
  0xc1   : > { %v1012_v63 = vshrl.u32 %v5797_v5, %v4490_v36  ;;  %vm1028_vm10 = vcmp.lt.s32.totalorder %v4509_v11, 1  ;;  %vm1031_vm11 = vcmp.lt.s32.totalorder %v4509_v11, 4  ;;  %vm1030_vm12 = vcmp.lt.s32.totalorder %v4509_v11, 3 }
  0xc2   : > { %v641_v58 = vadd.s32 536870912, %v640_v19  ;;  %v1027_v17 = vor.u32 %v1026_v24, %v1025_v61  ;;  %v1036_v18 = vsel %vm1028_vm10, %v1015_v52, %v1018_v46  ;;  %v1033_v10 = vsel %vm1031_vm11, %v1021_v57, 2102212464 }
  0xc3   : > { %v1037_v9 = vsel %vm1031_vm11, %v1024_v59, 920167782  ;;  %v1040_v30 = vsel %vm1028_vm10, %v1018_v46, %v1021_v57  ;;  %vm1029_vm13 = vcmp.lt.s32.totalorder %v4509_v11, 2  ;;  %vm903_vm14 = vcmp.gt.s32.totalorder %v902_v47, 0 }
  0xc4   : > { %v4565_v14 = vshrl.u32 %v641_v58, 30  ;;  %v1038_v36 = vsel %vm1030_vm12, %v1021_v57, %v1037_v9  ;;  %v1041_v23 = vsel %vm1031_vm11, %v1027_v17, 1326507024  ;;  %v1044_v39 = vshll.u32 %v1004_v13, 8 }
  0xc5   : > { %v1039_v32 = vsel %vm1029_vm13, %v1036_v18, %v1038_v36  ;;  %v1042_v35 = vsel %vm1030_vm12, %v1024_v59, %v1041_v23  ;;  %v1032_v43 = vsel %vm1028_vm10, %v1012_v63, %v1015_v52  ;;  %v1034_v40 = vsel %vm1030_vm12, %v1018_v46, %v1033_v10 }
  0xc6   : > { %v643_v25 = vshll.u32 %v4565_v14, 30  ;;  %v1043_v38 = vsel %vm1029_vm13, %v1040_v30, %v1042_v35  ;;  %v4578_v45 = vmul.u32.u64.low %v1044_v39, %v1039_v32  ;;  %v4579_v51 = vmul.u32.u64.high %v1044_v39, %v1039_v32, %v4578_v45 }
  0xc7   : > { %v4575_v22 = vmul.u32.u64.low %v1044_v39, %v1043_v38  ;;  %v4576_v41 = vmul.u32.u64.high %v1044_v39, %v1043_v38, %v4575_v22  ;;  %v4585_v13 = vshrl.u32 %v4492_v37, 5  ;;  %v4588_v57 = vsub.s32 32, %v4512_v12 }
  0xc8   : > { %v4582_v56 = vsub.s32 %v640_v19, %v643_v25  ;;  %v800_v52 = vsel %vm799_vm9, %v798_v62, 0  ;;  %v904_v46 = vsel %vm903_vm14, %v902_v47, 0  ;;  %v1208_v59 = vshrl.u32 %v1207_v50, 23 }
  0xc9   : > { %v4592_v61 = vmul.f32 6.2831855, %v4468_v16  ;;  %v1035_v63 = vsel %vm1029_vm13, %v1032_v43, %v1034_v40  ;;  %v4598_v19 = vshrl.u32 %v4524_v31, 5  ;;  %v4601_v37 = vsub.s32 32, %v4548_v54 }
  0xca   : > { %v646_v24 = vsub.s32 0, %v4582_v56  ;;  %vm1053_vm15 = vc.u32 %v4576_v41, %v4578_v45  ;;  %v1054_v62 = vadd.s32 1, %v4579_v51  ;;  %v4606_v47 = vshrl.u32 %v800_v52, 5 }
  0xcb   : > { %v4608_v16 = vand.u32 31, %v800_v52  ;;  %v4610_v50 = vshrl.u32 %v904_v46, 5  ;;  %v4614_v31 = vand.u32 31, %v904_v46  ;;  %v1051_v58 = vmul.u32 %v1044_v39, %v1035_v63 }
  0xcc   : > { %v3601_v11 = vmin.u32 %v646_v24, %v4582_v56  ;;  %v1055_v17 = vsel %vm1053_vm15, %v1054_v62, %v4579_v51  ;;  %v5785_v18 = vand.u32 2147483647, %v4435_v27  ;;  %v4618_v10 = vadd.s32 4294967169, %v1208_v59 }
  0xcd   : > { %v1311_v9 = vand.u32 2139095040, %v4592_v61  ;;  %v1118_v36 = vshrl.u32 %v5799_v3, %v4588_v57  ;;  %v636_v23 = vadd.s32 %v4505_v7, %v4521_v28  ;;  %v666_v32 = vsub.s32 4, %v4565_v14 }
  0xce   : > { %v648_v30 = vclz %v3601_v11  ;;  %v1056_v35 = vadd.s32 %v1055_v17, %v1051_v58  ;;  %v1117_v39 = vshll.u32 %v5797_v5, %v4512_v12  ;;  %v1121_v40 = vshrl.u32 %v5790_v8, %v4588_v57 }
  0xcf   : > { %v1124_v38 = vshrl.u32 %v5788_v15, %v4588_v57  ;;  %v1127_v7 = vshrl.u32 %v4269_v33, %v4588_v57  ;;  %v1107_v22 = vand.u32 8388607, %v5785_v18  ;;  %v1126_v53 = vshll.u32 %v5788_v15, %v4512_v12 }
  0xd0   : > { %v3602_v43 = vadd.s32 4294967294, %v648_v30  ;;  %v1057_v28 = vadd.s32 536870912, %v1056_v35  ;;  %v1130_v51 = vshrl.u32 %v5786_v49, %v4588_v57  ;;  %v1119_v52 = vor.u32 %v1118_v36, %v1117_v39 }
  0xd1   : > { %v1120_v46 = vshll.u32 %v5799_v3, %v4512_v12  ;;  %v1123_v59 = vshll.u32 %v5790_v8, %v4512_v12  ;;  %v1128_v62 = vor.u32 %v1127_v7, %v1126_v53  ;;  %v1129_v11 = vshll.u32 %v4269_v33, %v4512_v12 }
  0xd2   : > { %vm3603_vm2 = vcmp.lt.s32.totalorder %v3602_v43, 0  ;;  %v4650_v63 = vshrl.u32 %v1057_v28, 30  ;;  %v667_v36 = vsel %vm582_vm0, %v666_v32, %v4565_v14  ;;  %v1108_v49 = vor.u32 8388608, %v1107_v22 }
  0xd3   : > { %v651_v24 = vsel %vm3603_vm2, 0, %v3602_v43  ;;  %v1122_v30 = vor.u32 %v1121_v40, %v1120_v46  ;;  %v1125_v18 = vor.u32 %v1124_v38, %v1123_v59  ;;  %v1131_v15 = vor.u32 %v1130_v51, %v1129_v11 }
  0xd4   : > { %v652_v58 = vsub.s32 32, %v651_v24  ;;  %v656_v17 = vsub.s32 4294967266, %v651_v24  ;;  %v1059_v39 = vshll.u32 %v4650_v63, 30  ;;  %v653_v43 = vshll.u32 %v4582_v56, %v651_v24 }
  0xd5   : > { %vm1135_vm3 = vcmp.lt.s32.totalorder %v4585_v13, 4  ;;  %vm1132_vm4 = vcmp.lt.s32.totalorder %v4585_v13, 1  ;;  %vm1134_vm5 = vcmp.lt.s32.totalorder %v4585_v13, 3  ;;  %v1312_v56 = vshrl.u32 %v1311_v9, 23 }
  0xd6   : > { %v654_v28 = vshrl.u32 %v636_v23, %v652_v58  ;;  %v657_v8 = vadd.s32 127, %v656_v17  ;;  %v4660_v7 = vsub.s32 %v1056_v35, %v1059_v39  ;;  %v1141_v12 = vsel %vm1135_vm3, %v1128_v62, 920167782 }
  0xd7   : > { %v1140_v14 = vsel %vm1132_vm4, %v1119_v52, %v1122_v30  ;;  %v1142_v32 = vsel %vm1134_vm5, %v1125_v18, %v1141_v12  ;;  %v669_v23 = vsel %vm4630_vm1, 0, %v667_v36  ;;  %vm1133_vm6 = vcmp.lt.s32.totalorder %v4585_v13, 2 }
  0xd8   : > { %v655_v40 = vor.u32 %v654_v28, %v653_v43  ;;  %v658_v38 = vshll.u32 %v657_v8, 23  ;;  %v1062_v35 = vsub.s32 0, %v4660_v7  ;;  %v1137_v53 = vsel %vm1135_vm3, %v1125_v18, 2102212464 }
  0xd9   : > { %v1145_v51 = vsel %vm1135_vm3, %v1131_v15, 1326507024  ;;  %v1116_v8 = vshrl.u32 %v5797_v5, %v4588_v57  ;;  %v1143_v59 = vsel %vm1133_vm6, %v1140_v14, %v1142_v32  ;;  %v1144_v9 = vsel %vm1132_vm4, %v1122_v30, %v1125_v18 }
  0xda   : > { %v659_v22 = vor.u32 4788187, %v658_v38  ;;  %v3617_v46 = vmin.u32 %v1062_v35, %v4660_v7  ;;  %v662_v11 = vcvt.s32.f32 %v655_v40  ;;  %v1146_v58 = vsel %vm1134_vm5, %v1128_v62, %v1145_v51 }
  0xdb   : > { %v1148_v17 = vshll.u32 %v1108_v49, 8  ;;  %v4682_v36 = vsub.s32 32, %v4608_v16  ;;  %vm998_vm7 = vcmp.lt.s32.totalorder %v4418_v0, 0  ;;  %v1136_v57 = vsel %vm1132_vm4, %v1116_v8, %v1119_v52 }
  0xdc   : > { %v660_v24 = vand.u32 2147483647, %v659_v22  ;;  %v1064_v15 = vclz %v3617_v46  ;;  %v1138_v39 = vsel %vm1134_vm5, %v1122_v30, %v1137_v53  ;;  %v1147_v18 = vsel %vm1133_vm6, %v1144_v9, %v1146_v58 }
  0xdd   : > { %v4691_v28 = vmul.u32.u64.low %v1148_v17, %v1143_v59  ;;  %v4692_v12 = vmul.u32.u64.high %v1148_v17, %v1143_v59, %v4691_v28  ;;  %v673_v49 = vadd.s32 3, %v669_v23  ;;  %v4699_v14 = vsub.s32 32, %v4614_v31 }
  0xde   : > { %v663_v43 = vmul.f32 %v662_v11, %v660_v24  ;;  %v3618_v62 = vadd.s32 4294967294, %v1064_v15  ;;  %v4695_v40 = vmul.u32.u64.low %v1148_v17, %v1147_v18  ;;  %v4696_v38 = vmul.u32.u64.high %v1148_v17, %v1147_v18, %v4695_v40 }
  0xdf   : > { %v4702_v52 = vadd.s32 1, %v4618_v10  ;;  %v4704_v30 = vadd.s32 4294967169, %v1312_v56  ;;  %vm4708_vm8 = vcmp.le.f32.partialorder %v996_v4, 0.7853982  ;;  %v4712_v22 = vand.u32 3, %v669_v23 }
  0xe0   : > { %v664_v32 = vxor.u32 2147483648, %v663_v43  ;;  %v1052_v53 = vadd.s32 %v4578_v45, %v4576_v41  ;;  %vm3619_vm9 = vcmp.lt.s32.totalorder %v3618_v62, 0  ;;  %v1139_v51 = vsel %vm1133_vm6, %v1136_v57, %v1138_v39 }
  0xe1   : > { %v1067_v56 = vsel %vm3619_vm9, 0, %v3618_v62  ;;  %v1082_v46 = vsub.s32 4, %v4650_v63  ;;  %v1158_v4 = vadd.s32 1, %v4692_v12  ;;  %v4725_v8 = vand.u32 3, %v673_v49 }
  0xe2   : > { %v665_v10 = vsel %vm582_vm0, %v664_v32, %v663_v43  ;;  %v1068_v59 = vsub.s32 32, %v1067_v56  ;;  %v1072_v41 = vsub.s32 4294967266, %v1067_v56  ;;  %v1069_v45 = vshll.u32 %v4660_v7, %v1067_v56 }
  0xe3   : > { %v668_v23 = vsel %vm4630_vm1, %v4400_v44, %v665_v10  ;;  %v1155_v13 = vmul.u32 %v1148_v17, %v1139_v51  ;;  %vm1157_vm10 = vc.u32 %v4696_v38, %v4691_v28  ;;  %v1083_v25 = vsel %vm998_vm7, %v1082_v46, %v4650_v63 }
  0xe4   : > { %4062 = vcosq.f32 %v668_v23  ;;  %v1070_v9 = vshrl.u32 %v1052_v53, %v1068_v59  ;;  %v1073_v24 = vadd.s32 127, %v1072_v41  ;;  %v1159_v11 = vsel %vm1157_vm10, %v1158_v4, %v4692_v12 }
  0xe5   : > { %4064 = vsinq.f32 %v668_v23  ;;  %v1160_v58 = vadd.s32 %v1159_v11, %v1155_v13  ;;  %v684_v15 = vand.u32 2147483647, %v4445_v42  ;;  %v702_v57 = vshrl.u32 %v5799_v3, %v4601_v37 }
  0xe6   : > { %v1071_v7 = vor.u32 %v1070_v9, %v1069_v45  ;;  %v1074_v17 = vshll.u32 %v1073_v24, 23  ;;  %v5805_v39 = vmov 2131351028   ;;  %v5806_v12 = vmov 2102212464  }
  0xe7   : > { %v705_v43 = vshrl.u32 %v5805_v39, %v4601_v37  ;;  %v707_v18 = vshll.u32 %v5805_v39, %v4548_v54  ;;  %v1161_v49 = vadd.s32 536870912, %v1160_v58  ;;  %v708_v62 = vshrl.u32 %v5806_v12, %v4601_v37 }
  0xe8   : > { %v710_v63 = vshll.u32 %v5806_v12, %v4548_v54  ;;  %v711_v40 = vshrl.u32 %v4269_v33, %v4601_v37  ;;  %v1075_v32 = vor.u32 4788187, %v1074_v17  ;;  %v1085_v53 = vsel %vm4708_vm8, 0, %v1083_v25 }
  0xe9   : > { %v701_v51 = vshll.u32 %v5797_v5, %v4548_v54  ;;  %v704_v10 = vshll.u32 %v5799_v3, %v4548_v54  ;;  %v4753_v56 = vshrl.u32 %v1161_v49, 30  ;;  %v709_v46 = vor.u32 %v708_v62, %v707_v18 }
  0xea   : > { %v712_v4 = vor.u32 %v711_v40, %v710_v63  ;;  %v5807_v23 = vmov 1326507024   ;;  %vm679_vm11 = vcmp.eq.s32.totalorder %v4725_v8, 2  ;;  %vm1510_vm12 = vcmp.eq.s32.totalorder %v4712_v22, 2 }
  0xeb   : > { %v714_v59 = vshrl.u32 %v5807_v23, %v4601_v37  ;;  %v1076_v41 = vand.u32 2147483647, %v1075_v32  ;;  %v1078_v45 = vcvt.s32.f32 %v1071_v7  ;;  %v691_v13 = vand.u32 8388607, %v684_v15 }
  0xec   : > { %vm676_vm13 = vcmp.eq.s32.totalorder %v4725_v8, 0  ;;  %vm1507_vm14 = vcmp.eq.s32.totalorder %v4712_v22, 0  ;;  %v1163_v9 = vshll.u32 %v4753_v56, 30  ;;  %v703_v24 = vor.u32 %v702_v57, %v701_v51 }
  0xed   : > { %v706_v11 = vor.u32 %v705_v43, %v704_v10  ;;  %v713_v25 = vshll.u32 %v4269_v33, %v4548_v54  ;;  %vm1215_vm15 = vcmp.gt.s32.totalorder %v4702_v52, 0  ;;  %vm675_vm0 = vcmp.lt.s32.totalorder %v4725_v8, 2 }
  0xee   : > { %vm1506_vm1 = vcmp.lt.s32.totalorder %v4712_v22, 2  ;;  %vm2244_vm2 = vcmask 261120   ;;  %v1079_v7 = vmul.f32 %v1078_v45, %v1076_v41  ;;  %v1089_v17 = vadd.s32 3, %v1085_v53 }
  0xef   : > { %v4769_v18 = vand.u32 3, %v1085_v53  ;;  %vm719_vm3 = vcmp.lt.s32.totalorder %v4598_v19, 4  ;;  %vm672_vm4 = vweird.f32 %v4400_v44  ;;  %v4773_v57 = vsub.s32 %v1160_v58, %v1163_v9 }
  0xf0   : > { %v715_v43 = vor.u32 %v714_v59, %v713_v25  ;;  %v721_v54 = vsel %vm719_vm3, %v709_v46, 2102212464  ;;  %v725_v49 = vsel %vm719_vm3, %v712_v4, 920167782  ;;  %v1080_v62 = vxor.u32 2147483648, %v1079_v7 }
  0xf1   : > { %v700_v63 = vshrl.u32 %v5797_v5, %v4601_v37  ;;  %vm716_vm5 = vcmp.lt.s32.totalorder %v4598_v19, 1  ;;  %vm718_vm6 = vcmp.lt.s32.totalorder %v4598_v19, 3  ;;  %v1166_v40 = vsub.s32 0, %v4773_v57  ;;  %v4063_v51 = vpop.eup %4062 }
  0xf2   : > { %v692_v32 = vor.u32 8388608, %v691_v13  ;;  %v724_v58 = vsel %vm716_vm5, %v703_v24, %v706_v11  ;;  %v726_v53 = vsel %vm718_vm6, %v709_v46, %v725_v49  ;;  %v1081_v10 = vsel %vm998_vm7, %v1080_v62, %v1079_v7  ;;  %v4065_v41 = vpop.eup %4064 }
  0xf3   : > { %vm717_vm9 = vcmp.lt.s32.totalorder %v4598_v19, 2  ;;  %v720_v37 = vsel %vm716_vm5, %v700_v63, %v703_v24  ;;  %v722_v59 = vsel %vm718_vm6, %v706_v11, %v721_v54  ;;  %v680_v45 = vxor.u32 2147483648, %v4063_v51  ;;  %v4862_v19 = vld [vmem:[%s5774_s3 + $0x18] sm:$0xff] }
  0xf4   : > { %v1084_v13 = vsel %vm4708_vm8, %v4418_v0, %v1081_v10  ;;  %v3621_v9 = vmin.u32 %v1166_v40, %v4773_v57  ;;  %v729_v25 = vsel %vm719_vm3, %v715_v43, 1326507024  ;;  %v677_v7 = vxor.u32 2147483648, %v4065_v41  ;;  %3877 = vmatprep.subr.mxu1 %v4862_v19 }
  0xf5   : > { %4066 = vcosq.f32 %v1084_v13  ;;  %v727_v49 = vsel %vm717_vm9, %v724_v58, %v726_v53  ;;  %v728_v24 = vsel %vm716_vm5, %v706_v11, %v709_v46  ;;  %v681_v54 = vsel %vm679_vm11, %v680_v45, %v4065_v41 }
  0xf6   : > { %v1512_v35 = vsel %vm1510_vm12, %v680_v45, %v4065_v41  ;;  %4068 = vsinq.f32 %v1084_v13  ;;  %v1168_v62 = vclz %v3621_v9  ;;  %v678_v63 = vsel %vm676_vm13, %v4063_v51, %v677_v7 }
  0xf7   : > { %v1509_v43 = vsel %vm1507_vm14, %v4063_v51, %v677_v7  ;;  %v730_v40 = vsel %vm718_vm6, %v712_v4, %v729_v25  ;;  %v732_v58 = vshll.u32 %v692_v32, 8  ;;  %v682_v46 = vsel %vm675_vm0, %v678_v63, %v681_v54 }
  0xf8   : > { %v1513_v11 = vsel %vm1506_vm1, %v1509_v43, %v1512_v35  ;;  %v3622_v53 = vadd.s32 4294967294, %v1168_v62  ;;  %v731_v10 = vsel %vm717_vm9, %v728_v24, %v730_v40  ;;  %v4823_v41 = vsel %vm672_vm4, nan, %v682_v46 }
  0xf9   : > { %v4827_v51 = vsel %vm672_vm4, nan, %v1513_v11  ;;  %v4829_v4 = vmul.u32.u64.low %v732_v58, %v731_v10  ;;  %v4830_v32 = vmul.u32.u64.high %v732_v58, %v731_v10, %v4829_v4  ;;  %v4835_v22 = vsel %vm1215_vm15, %v4702_v52, 0 }
  0xfa   : > { %3865 = vmatprep.mubr.msk.f32.mxu0 %vm2244_vm2, %v4827_v51  ;;  %vm3623_vm7 = vcmp.lt.s32.totalorder %v3622_v53, 0  ;;  %v4839_v8 = vmul.u32.u64.low %v732_v58, %v727_v49  ;;  %v4840_v45 = vmul.u32.u64.high %v732_v58, %v727_v49, %v4839_v8  ;;  %v4844_v44 = vadd.s32 1, %v4704_v30 }
  0xfb   : > { %v1090_v13 = vand.u32 3, %v1089_v17  ;;  %vm1102_vm8 = vcmp.lt.s32.totalorder %v4435_v27, 0  ;;  %v1171_v9 = vsel %vm3623_vm7, 0, %v3622_v53  ;;  %v1156_v25 = vadd.s32 %v4691_v28, %v4696_v38 }
  0xfc   : > { %v1172_v52 = vsub.s32 32, %v1171_v9  ;;  %v1176_v7 = vsub.s32 4294967266, %v1171_v9  ;;  %v723_v24 = vsel %vm717_vm9, %v720_v37, %v722_v59  ;;  %vm1919_vm10 = vcmp.eq.s32.totalorder %v4769_v18, 0 }
  0xfd   : > { %v1186_v49 = vsub.s32 4, %v4753_v56  ;;  %vm741_vm11 = vc.u32 %v4830_v32, %v4839_v8  ;;  %v5792_v30 = vand.u32 2147483647, %v4461_v60  ;;  %vm1918_vm12 = vcmp.lt.s32.totalorder %v4769_v18, 2 }
  0xfe   : > { %v1173_v17 = vshll.u32 %v4773_v57, %v1171_v9  ;;  %v1174_v54 = vshrl.u32 %v1156_v25, %v1172_v52  ;;  %v1177_v28 = vadd.s32 127, %v1176_v7  ;;  %v742_v38 = vadd.s32 1, %v4840_v45 }
  0xff   : > { %vm1088_vm13 = vweird.f32 %v4418_v0  ;;  %vm1091_vm14 = vcmp.lt.s32.totalorder %v1090_v13, 2  ;;  %vm1092_vm15 = vcmp.eq.s32.totalorder %v1090_v13, 0  ;;  %vm1922_vm0 = vcmp.eq.s32.totalorder %v4769_v18, 2 }
 0x100   : > { %v739_v37 = vmul.u32 %v732_v58, %v723_v24  ;;  %vm1095_vm1 = vcmp.eq.s32.totalorder %v1090_v13, 2  ;;  %v1175_v57 = vor.u32 %v1174_v54, %v1173_v17  ;;  %v1178_v59 = vshll.u32 %v1177_v28, 23 }
 0x101   : > { %v743_v35 = vsel %vm741_vm11, %v742_v38, %v4840_v45  ;;  %v1187_v62 = vsel %vm1102_vm8, %v1186_v49, %v4753_v56  ;;  %v4876_v43 = vand.u32 8388607, %v5792_v30  ;;  %v805_v40 = vshll.u32 %v5797_v5, %v4608_v16 }
 0x102   : > { %v744_v63 = vadd.s32 %v743_v35, %v739_v37  ;;  %v4067_v58 = vpop.eup %4066  ;;  %v1179_v46 = vor.u32 4788187, %v1178_v59  ;;  %v806_v11 = vshrl.u32 %v5799_v3, %v4682_v36  ;;  %v808_v53 = vshll.u32 %v5799_v3, %v4608_v16 }
 0x103   : > { %v809_v10 = vshrl.u32 %v5805_v39, %v4682_v36  ;;  %v4069_v56 = vpop.eup %4068  ;;  %v1096_v4 = vxor.u32 2147483648, %v4067_v58  ;;  %v811_v9 = vshll.u32 %v5805_v39, %v4608_v16  ;;  %v812_v25 = vshrl.u32 %v5806_v12, %v4682_v36 }
 0x104   : > { %v745_v45 = vadd.s32 536870912, %v744_v63  ;;  %v1093_v52 = vxor.u32 2147483648, %v4069_v56  ;;  %v1180_v7 = vand.u32 2147483647, %v1179_v46  ;;  %v1182_v24 = vcvt.s32.f32 %v1175_v57 }
 0x105   : > { %v815_v49 = vshrl.u32 %v4269_v33, %v4682_v36  ;;  %v1097_v17 = vsel %vm1095_vm1, %v1096_v4, %v4069_v56  ;;  %v1924_v54 = vsel %vm1922_vm0, %v1096_v4, %v4069_v56  ;;  %v814_v38 = vshll.u32 %v5806_v12, %v4608_v16 }
 0x106   : > { %v4895_v28 = vshrl.u32 %v745_v45, 30  ;;  %v1094_v37 = vsel %vm1092_vm15, %v4067_v58, %v1093_v52  ;;  %v1921_v59 = vsel %vm1919_vm10, %v4067_v58, %v1093_v52  ;;  %v1183_v35 = vmul.f32 %v1182_v24, %v1180_v7 }
 0x107   : > { %v818_v57 = vshrl.u32 %v5807_v23, %v4682_v36  ;;  %v1098_v46 = vsel %vm1091_vm14, %v1094_v37, %v1097_v17  ;;  %v1925_v30 = vsel %vm1918_vm12, %v1921_v59, %v1924_v54  ;;  %v817_v4 = vshll.u32 %v4269_v33, %v4608_v16 }
 0x108   : > { %v747_v56 = vshll.u32 %v4895_v28, 30  ;;  %v4912_v45 = vsel %vm1088_vm13, nan, %v1098_v46  ;;  %v4916_v58 = vsel %vm1088_vm13, nan, %v1925_v30  ;;  %v1184_v52 = vxor.u32 2147483648, %v1183_v35 }
 0x109   : > { %v816_v7 = vor.u32 %v815_v49, %v814_v38  ;;  %vm1319_vm3 = vcmp.gt.s32.totalorder %v4844_v44, 0  ;;  %3871 = vmatprep.mubr.msk.f32.mxu1 %vm2244_vm2, %v4916_v58  ;;  %v807_v13 = vor.u32 %v806_v11, %v805_v40  ;;  %v810_v24 = vor.u32 %v809_v10, %v808_v53 }
 0x10a   : > { %v4921_v18 = vsub.s32 %v744_v63, %v747_v56  ;;  %v5808_v16 = vand.u32 2147483647, %v4435_v27  ;;  %v1185_v17 = vsel %vm1102_vm8, %v1184_v52, %v1183_v35  ;;  %v813_v0 = vor.u32 %v812_v25, %v811_v9 }
 0x10b   : > { %v819_v30 = vor.u32 %v818_v57, %v817_v4  ;;  %vm823_vm5 = vcmp.lt.s32.totalorder %v4606_v47, 4  ;;  %v796_v63 = vor.u32 8388608, %v4876_v43  ;;  %vm820_vm6 = vcmp.lt.s32.totalorder %v4606_v47, 1 }
 0x10c   : > { %vm1101_vm4 = vcmp.le.f32.partialorder %v5808_v16, 0.7853982  ;;  %v750_v38 = vsub.s32 0, %v4921_v18  ;;  %v829_v40 = vsel %vm823_vm5, %v816_v7, 920167782  ;;  %vm822_vm9 = vcmp.lt.s32.totalorder %v4606_v47, 3 }
 0x10d   : > { %v1188_v54 = vsel %vm1101_vm4, %v4435_v27, %v1185_v17  ;;  %v4928_v49 = vsel %vm1101_vm4, 0, %v1187_v62  ;;  %v828_v53 = vsel %vm820_vm6, %v807_v13, %v810_v24  ;;  %v825_v62 = vsel %vm823_vm5, %v813_v0, 2102212464 }
 0x10e   : > { %4070 = vcosq.f32 %v1188_v54  ;;  %v3605_v11 = vmin.u32 %v750_v38, %v4921_v18  ;;  %v830_v10 = vsel %vm822_vm9, %v813_v0, %v829_v40  ;;  %v832_v9 = vsel %vm820_vm6, %v810_v24, %v813_v0 }
 0x10f   : > { %4072 = vsinq.f32 %v1188_v54  ;;  %v833_v25 = vsel %vm823_vm5, %v819_v30, 1326507024  ;;  %v4943_v43 = vand.u32 3, %v4928_v49  ;;  %v804_v59 = vshrl.u32 %v5797_v5, %v4682_v36 }
 0x110   : > { %v752_v37 = vclz %v3605_v11  ;;  %vm821_vm7 = vcmp.lt.s32.totalorder %v4606_v47, 2  ;;  %v770_v35 = vsub.s32 4, %v4895_v28  ;;  %v834_v46 = vsel %vm822_vm9, %v816_v7, %v833_v25 }
 0x111   : > { %v831_v57 = vsel %vm821_vm7, %v828_v53, %v830_v10  ;;  %v836_v56 = vshll.u32 %v796_v63, 8  ;;  %v824_v52 = vsel %vm820_vm6, %v804_v59, %v807_v13  ;;  %v826_v16 = vsel %vm822_vm9, %v810_v24, %v825_v62 }
 0x112   : > { %v3606_v4 = vadd.s32 4294967294, %v752_v37  ;;  %v835_v36 = vsel %vm821_vm7, %v832_v9, %v834_v46  ;;  %v4967_v7 = vand.u32 31, %v4835_v22  ;;  %v4972_v13 = vsel %vm1319_vm3, %v4844_v44, 0  ;;  %v5095_v44 = vld [vmem:[%s5776_s5 + $0x18] sm:$0xff] }
 0x113   : > { %v4959_v17 = vmul.u32.u64.low %v836_v56, %v835_v36  ;;  %v4960_v0 = vmul.u32.u64.high %v836_v56, %v835_v36, %v4959_v17  ;;  %v4962_v30 = vmul.u32.u64.low %v836_v56, %v831_v57  ;;  %v4963_v54 = vmul.u32.u64.high %v836_v56, %v831_v57, %v4962_v30 }
 0x114   : > { %vm686_vm8 = vcmp.lt.s32.totalorder %v4445_v42, 0  ;;  %vm3607_vm10 = vcmp.lt.s32.totalorder %v3606_v4, 0  ;;  %vm2022_vm11 = vcmp.eq.s32.totalorder %v4943_v43, 0  ;;  %v827_v38 = vsel %vm821_vm7, %v824_v52, %v826_v16 }
 0x115   : > { %v755_v24 = vsel %vm3607_vm10, 0, %v3606_v4  ;;  %v5796_v63 = vand.u32 2147483647, %v4463_v1  ;;  %v910_v40 = vshrl.u32 %v5799_v3, %v4699_v14  ;;  %vm2021_vm12 = vcmp.lt.s32.totalorder %v4943_v43, 2 }
 0x116   : > { %vm2025_vm13 = vcmp.eq.s32.totalorder %v4943_v43, 2  ;;  %vm4985_vm14 = vcmp.le.f32.partialorder %v684_v15, 0.7853982  ;;  %v740_v11 = vadd.s32 %v4839_v8, %v4830_v32  ;;  %v756_v47 = vsub.s32 32, %v755_v24  ;;  %v2238_v43 = vld [vmem:[%s5774_s3 + $0x10] sm:$0xff] }
 0x117   : > { %v760_v53 = vsub.s32 4294967266, %v755_v24  ;;  %vm1192_vm15 = vweird.f32 %v4435_v27  ;;  %v771_v62 = vsel %vm686_vm8, %v770_v35, %v4895_v28  ;;  %vm845_vm0 = vc.u32 %v4960_v0, %v4962_v30 }
 0x118   : > { %v846_v10 = vadd.s32 1, %v4963_v54  ;;  %v909_v15 = vshll.u32 %v5797_v5, %v4614_v31  ;;  %v757_v9 = vshll.u32 %v4921_v18, %v755_v24  ;;  %v758_v25 = vshrl.u32 %v740_v11, %v756_v47 }
 0x119   : > { %v761_v32 = vadd.s32 127, %v760_v53  ;;  %v843_v8 = vmul.u32 %v836_v56, %v827_v38  ;;  %v5004_v59 = vand.u32 8388607, %v5796_v63  ;;  %v913_v35 = vshrl.u32 %v5805_v39, %v4699_v14 }
 0x11a   : > { %v847_v37 = vsel %vm845_vm0, %v846_v10, %v4963_v54  ;;  %v5006_v28 = vor.u32 %v910_v40, %v909_v15  ;;  %v759_v46 = vor.u32 %v758_v25, %v757_v9  ;;  %v912_v18 = vshll.u32 %v5799_v3, %v4614_v31 }
 0x11b   : > { %v5010_v57 = vpop.eup %4070  ;;  %v762_v4 = vshll.u32 %v761_v32, 23  ;;  %v848_v52 = vadd.s32 %v847_v37, %v843_v8  ;;  %v916_v36 = vshrl.u32 %v5806_v12, %v4699_v14  ;;  %v918_v17 = vshll.u32 %v5806_v12, %v4614_v31 }
 0x11c   : > { %v5014_v56 = vpop.eup %4072  ;;  %v5793_v16 = vxor.u32 2147483648, %v5010_v57  ;;  %v919_v54 = vshrl.u32 %v4269_v33, %v4699_v14  ;;  %v915_v11 = vshll.u32 %v5805_v39, %v4614_v31  ;;  %v914_v53 = vor.u32 %v913_v35, %v912_v18 }
 0x11d   : > { %v5794_v24 = vxor.u32 2147483648, %v5014_v56  ;;  %v763_v38 = vor.u32 4788187, %v762_v4  ;;  %v849_v40 = vadd.s32 536870912, %v848_v52  ;;  %v922_v15 = vshrl.u32 %v5807_v23, %v4699_v14 }
 0x11e   : > { %v2027_v47 = vsel %vm2025_vm13, %v5793_v16, %v5014_v56  ;;  %v920_v10 = vor.u32 %v919_v54, %v918_v17  ;;  %v766_v32 = vcvt.s32.f32 %v759_v46  ;;  %v773_v4 = vsel %vm4985_vm14, 0, %v771_v62 }
 0x11f   : > { %v2024_v9 = vsel %vm2022_vm11, %v5010_v57, %v5794_v24  ;;  %v764_v25 = vand.u32 2147483647, %v763_v38  ;;  %v850_v8 = vshrl.u32 %v849_v40, 30  ;;  %v917_v35 = vor.u32 %v916_v36, %v915_v11 }
 0x120   : > { %v2028_v37 = vsel %vm2021_vm12, %v2024_v9, %v2027_v47  ;;  %v921_v18 = vshll.u32 %v4269_v33, %v4614_v31  ;;  %vm927_vm1 = vcmp.lt.s32.totalorder %v4610_v50, 4  ;;  %v900_v62 = vor.u32 8388608, %v5004_v59  ;;  %v2237_v59 = vld [vmem:[%s5774_s3 + $0x8] sm:$0xff]  ;;  %v2236_v9 = vld [vmem:[%s5774_s3] sm:$0xff] }
 0x121   : > { %v5046_v17 = vsel %vm1192_vm15, nan, %v2028_v37  ;;  %v767_v54 = vmul.f32 %v766_v32, %v764_v25  ;;  %v851_v16 = vshll.u32 %v850_v8, 30  ;;  %vm924_vm3 = vcmp.lt.s32.totalorder %v4610_v50, 1 }
 0x122   : > { %3872 = vmatmul.mubr.msk.f32.vlgmr.msra.gmra.mxu1 %vm2244_vm2, %v5046_v17  ;;  %v923_v46 = vor.u32 %v922_v15, %v921_v18  ;;  %v933_v31 = vsel %vm927_vm1, %v920_v10, 920167782  ;;  %vm926_vm4 = vcmp.lt.s32.totalorder %v4610_v50, 3  ;;  %v932_v40 = vsel %vm924_vm3, %v5006_v28, %v914_v53 }
 0x123   : > { %v768_v36 = vxor.u32 2147483648, %v767_v54  ;;  %v5058_v38 = vsub.s32 %v848_v52, %v851_v16  ;;  %3878 = vmatpush3.msra.mxu1 %v4862_v19  ;;  %v777_v11 = vadd.s32 3, %v773_v4  ;;  %vm790_vm5 = vcmp.lt.s32.totalorder %v4461_v60, 0 }
 0x124   : > { %v908_v47 = vshrl.u32 %v5797_v5, %v4699_v14  ;;  %v934_v52 = vsel %vm926_vm4, %v917_v35, %v933_v31  ;;  %3879 = vmatprep.subr.mxu1 %v2238_v43  ;;  %vm925_vm6 = vcmp.lt.s32.totalorder %v4610_v50, 2  ;;  %v929_v19 = vsel %vm927_vm1, %v917_v35, 2102212464 }
 0x125   : > { %v769_v16 = vsel %vm686_vm8, %v768_v36, %v767_v54  ;;  %v854_v15 = vsub.s32 0, %v5058_v38  ;;  %3880 = vmatpush3.msra.mxu1 %v2238_v43  ;;  %v935_v25 = vsel %vm925_vm6, %v932_v40, %v934_v52  ;;  %v936_v32 = vsel %vm924_vm3, %v914_v53, %v917_v35 }
 0x126   : > { %v772_v14 = vsel %vm4985_vm14, %v4445_v42, %v769_v16  ;;  %v937_v37 = vsel %vm927_vm1, %v923_v46, 1326507024  ;;  %3881 = vmatprep.subr.mxu1 %v2237_v59  ;;  %v874_v54 = vsub.s32 4, %v850_v8  ;;  %v940_v43 = vshll.u32 %v900_v62, 8 }
 0x127   : > { %4074 = vcosq.f32 %v772_v14  ;;  %v3609_v18 = vmin.u32 %v854_v15, %v5058_v38  ;;  %3882 = vmatpush3.msra.mxu1 %v2237_v59  ;;  %v928_v35 = vsel %vm924_vm3, %v908_v47, %v5006_v28  ;;  %v930_v46 = vsel %vm926_vm4, %v914_v53, %v929_v19 }
 0x128   : > { %4076 = vsinq.f32 %v772_v14  ;;  %v938_v31 = vsel %vm926_vm4, %v920_v10, %v937_v37  ;;  %3883 = vmatprep.subr.mxu1 %v2236_v9  ;;  %v5106_v40 = vmul.u32.u64.low %v940_v43, %v935_v25  ;;  %v5107_v59 = vmul.u32.u64.high %v940_v43, %v935_v25, %v5106_v40 }
 0x129   : > { %v856_v36 = vclz %v3609_v18  ;;  %v939_v62 = vsel %vm925_vm6, %v936_v32, %v938_v31  ;;  %3884 = vmatpush3.msra.mxu1 %v2236_v9  ;;  %v5110_v52 = vand.u32 3, %v777_v11  ;;  %v5112_v16 = vand.u32 3, %v773_v4 }
 0x12a   : > { %v5114_v28 = vmul.u32.u64.low %v940_v43, %v939_v62  ;;  %v5115_v47 = vmul.u32.u64.high %v940_v43, %v939_v62, %v5114_v28  ;;  %3917 = vmatprep.subr.mxu1 %v5095_v44  ;;  %v1219_v53 = vsub.s32 32, %v4967_v7  ;;  %v875_v15 = vsel %vm790_vm5, %v874_v54, %v850_v8 }
 0x12b   : > { %v3610_v10 = vadd.s32 4294967294, %v856_v36  ;;  %v931_v19 = vsel %vm925_vm6, %v928_v35, %v930_v46  ;;  %v5124_v9 = vshrl.u32 %v4835_v22, 5  ;;  %v5127_v4 = vand.u32 31, %v4972_v13 }
 0x12c   : > { %v5795_v11 = vand.u32 2147483647, %v4517_v20  ;;  %v5811_v14 = vand.u32 2147483647, %v4461_v60  ;;  %v844_v8 = vadd.s32 %v4962_v30, %v4960_v0  ;;  %v950_v50 = vadd.s32 1, %v5107_v59 }
 0x12d   : > { %vm3611_vm7 = vcmp.lt.s32.totalorder %v3610_v10, 0  ;;  %vm783_vm8 = vcmp.eq.s32.totalorder %v5110_v52, 2  ;;  %vm1613_vm10 = vcmp.eq.s32.totalorder %v5112_v16, 2  ;;  %v947_v37 = vmul.u32 %v940_v43, %v931_v19 }
 0x12e   : > { %vm5132_vm9 = vcmp.le.f32.partialorder %v5811_v14, 0.7853982  ;;  %v859_v22 = vsel %vm3611_vm7, 0, %v3610_v10  ;;  %vm949_vm11 = vc.u32 %v5115_v47, %v5106_v40  ;;  %vm780_vm12 = vcmp.eq.s32.totalorder %v5110_v52, 0 }
 0x12f   : > { %v5143_v32 = vsel %vm5132_vm9, 0, %v875_v15  ;;  %vm1610_vm13 = vcmp.eq.s32.totalorder %v5112_v16, 0  ;;  %v860_v0 = vsub.s32 32, %v859_v22  ;;  %v864_v30 = vsub.s32 4294967266, %v859_v22 }
 0x130   : > { %v951_v18 = vsel %vm949_vm11, %v950_v50, %v5107_v59  ;;  %v1222_v54 = vshrl.u32 %v5799_v3, %v1219_v53  ;;  %vm779_vm14 = vcmp.lt.s32.totalorder %v5110_v52, 2  ;;  %vm1609_vm0 = vcmp.lt.s32.totalorder %v5112_v16, 2 }
 0x131   : > { %v952_v35 = vadd.s32 %v951_v18, %v947_v37  ;;  %v5155_v43 = vand.u32 8388607, %v5795_v11  ;;  %v1220_v46 = vshrl.u32 %v5797_v5, %v1219_v53  ;;  %v1225_v31 = vshrl.u32 %v5805_v39, %v1219_v53 }
 0x132   : > { %vm776_vm1 = vweird.f32 %v4445_v42  ;;  %v861_v36 = vshll.u32 %v5058_v38, %v859_v22  ;;  %v862_v62 = vshrl.u32 %v844_v8, %v860_v0  ;;  %v865_v59 = vadd.s32 127, %v864_v30 }
 0x133   : > { %v1221_v28 = vshll.u32 %v5797_v5, %v4967_v7  ;;  %v953_v10 = vadd.s32 536870912, %v952_v35  ;;  %v1224_v15 = vshll.u32 %v5799_v3, %v4967_v7  ;;  %v1228_v19 = vshrl.u32 %v5806_v12, %v1219_v53 }
 0x134   : > { %v1231_v14 = vshrl.u32 %v4269_v33, %v1219_v53  ;;  %v863_v50 = vor.u32 %v862_v62, %v861_v36  ;;  %v866_v37 = vshll.u32 %v865_v59, 23  ;;  %v1227_v24 = vshll.u32 %v5805_v39, %v4967_v7  ;;  %v4075_v38 = vpop.eup %4074 }
 0x135   : > { %v1223_v18 = vor.u32 %v1222_v54, %v1221_v28  ;;  %v5169_v8 = vshrl.u32 %v953_v10, 30  ;;  %v1212_v22 = vor.u32 8388608, %v5155_v43  ;;  %v1226_v0 = vor.u32 %v1225_v31, %v1224_v15  ;;  %v4077_v11 = vpop.eup %4076 }
 0x136   : > { %v1230_v30 = vshll.u32 %v5806_v12, %v4967_v7  ;;  %v784_v63 = vxor.u32 2147483648, %v4075_v38  ;;  %v867_v5 = vor.u32 4788187, %v866_v37  ;;  %v1233_v36 = vshll.u32 %v4269_v33, %v4967_v7 }
 0x137   : > { %v1234_v54 = vshrl.u32 %v5807_v23, %v1219_v53  ;;  %v781_v62 = vxor.u32 2147483648, %v4077_v11  ;;  %v955_v59 = vshll.u32 %v5169_v8, 30  ;;  %v1229_v28 = vor.u32 %v1228_v19, %v1227_v24 }
 0x138   : > { %v1232_v10 = vor.u32 %v1231_v14, %v1230_v30  ;;  %v785_v43 = vsel %vm783_vm8, %v784_v63, %v4077_v11  ;;  %v1615_v31 = vsel %vm1613_vm10, %v784_v63, %v4077_v11  ;;  %v868_v15 = vand.u32 2147483647, %v867_v5  ;;  %v2571_v30 = vld [vmem:[%s5776_s5 + $0x28] sm:$0xff] }
 0x139   : > { %v870_v3 = vcvt.s32.f32 %v863_v50  ;;  %v782_v37 = vsel %vm780_vm12, %v4075_v38, %v781_v62  ;;  %v1612_v7 = vsel %vm1610_vm13, %v4075_v38, %v781_v62  ;;  %v5186_v53 = vsub.s32 %v952_v35, %v955_v59  ;;  %v2572_v35 = vld [vmem:[%s5776_s5 + $0x30] sm:$0xff]  ;;  %v4254_v50 = vld [vmem:[%s5776_s5 + $0x38] sm:$0xff] }
 0x13a   : > { %vm1236_vm3 = vcmp.lt.s32.totalorder %v5124_v9, 1  ;;  %v786_v24 = vsel %vm779_vm14, %v782_v37, %v785_v43  ;;  %v1616_v19 = vsel %vm1609_vm0, %v1612_v7, %v1615_v31  ;;  %v1235_v63 = vor.u32 %v1234_v54, %v1233_v36 }
 0x13b   : > { %v871_v14 = vmul.f32 %v870_v3, %v868_v15  ;;  %v5195_v5 = vsel %vm776_vm1, nan, %v786_v24  ;;  %v5199_v11 = vsel %vm776_vm1, nan, %v1616_v19  ;;  %v958_v52 = vsub.s32 0, %v5186_v53  ;;  %v2570_v15 = vld [vmem:[%s5776_s5 + $0x20] sm:$0xff] }
 0x13c   : > { %vm1239_vm4 = vcmp.lt.s32.totalorder %v5124_v9, 4  ;;  %3866 = vmatmul.mubr.msk.f32.vlgmr.msra.gmra.mxu0 %vm2244_vm2, %v5199_v11  ;;  %vm1237_vm6 = vcmp.lt.s32.totalorder %v5124_v9, 2  ;;  %v1244_v16 = vsel %vm1236_vm3, %v1223_v18, %v1226_v0  ;;  %vm1238_vm7 = vcmp.lt.s32.totalorder %v5124_v9, 3 }
 0x13d   : > { %v872_v3 = vxor.u32 2147483648, %v871_v14  ;;  %v1245_v42 = vsel %vm1239_vm4, %v1232_v10, 920167782  ;;  %3898 = vmatpush3.msra.mxu0 %v4254_v50  ;;  %v3613_v38 = vmin.u32 %v958_v52, %v5186_v53  ;;  %v1240_v36 = vsel %vm1236_vm3, %v1220_v46, %v1223_v18 }
 0x13e   : > { %v1241_v54 = vsel %vm1239_vm4, %v1229_v28, 2102212464  ;;  %3899 = vmatprep.subr.mxu0 %v2572_v35  ;;  %v1246_v59 = vsel %vm1238_vm7, %v1229_v28, %v1245_v42  ;;  %v1248_v43 = vsel %vm1236_vm3, %v1226_v0, %v1229_v28  ;;  %v1249_v31 = vsel %vm1239_vm4, %v1235_v63, 1326507024 }
 0x13f   : > { %v873_v62 = vsel %vm790_vm5, %v872_v3, %v871_v14  ;;  %3900 = vmatpush3.msra.mxu0 %v2572_v35  ;;  %v960_v18 = vclz %v3613_v38  ;;  %v1247_v37 = vsel %vm1237_vm6, %v1244_v16, %v1246_v59  ;;  %v1250_v7 = vsel %vm1238_vm7, %v1232_v10, %v1249_v31  ;;  %v5250_v14 = vld [vmem:[%s5780_s9 + $0x18] sm:$0xff] }
 0x140   : > { %v876_v46 = vsel %vm5132_vm9, %v4461_v60, %v873_v62  ;;  %3901 = vmatprep.subr.mxu0 %v2571_v30  ;;  %v1242_v28 = vsel %vm1238_vm7, %v1226_v0, %v1241_v54  ;;  %v1251_v25 = vsel %vm1237_vm6, %v1248_v43, %v1250_v7  ;;  %v1252_v24 = vshll.u32 %v1212_v22, 8 }
 0x141   : > { %4078 = vcosq.f32 %v876_v46  ;;  %v3614_v19 = vadd.s32 4294967294, %v960_v18  ;;  %3902 = vmatpush3.msra.mxu0 %v2571_v30  ;;  %v5260_v0 = vsub.s32 32, %v5127_v4  ;;  %v5263_v22 = vand.u32 3, %v5143_v32 }
 0x142   : > { %4080 = vsinq.f32 %v876_v46  ;;  %3903 = vmatprep.subr.mxu0 %v2570_v15  ;;  %v5252_v63 = vmul.u32.u64.low %v1252_v24, %v1251_v25  ;;  %v5253_v10 = vmul.u32.u64.high %v1252_v24, %v1251_v25, %v5252_v63  ;;  %v1243_v3 = vsel %vm1237_vm6, %v1240_v36, %v1242_v28 }
 0x143   : > { %v5255_v35 = vmul.u32.u64.low %v1252_v24, %v1247_v37  ;;  %v5256_v52 = vmul.u32.u64.high %v1252_v24, %v1247_v37, %v5255_v35  ;;  %vm3615_vm5 = vcmp.lt.s32.totalorder %v3614_v19, 0  ;;  %3904 = vmatpush3.msra.mxu0 %v2570_v15  ;;  %v1308_v42 = vand.u32 2147483647, %v4592_v61 }
 0x144   : > { %v963_v16 = vsel %vm3615_vm5, 0, %v3614_v19  ;;  %3937 = vmatprep.subr.mxu0 %v5250_v14  ;;  %v948_v50 = vadd.s32 %v5106_v40, %v5115_v47  ;;  %v5272_v54 = vshrl.u32 %v4972_v13, 5  ;;  %v1259_v62 = vmul.u32 %v1252_v24, %v1243_v3 }
 0x145   : > { %v964_v38 = vsub.s32 32, %v963_v16  ;;  %v968_v30 = vsub.s32 4294967266, %v963_v16  ;;  %vm1261_vm9 = vc.u32 %v5253_v10, %v5255_v35  ;;  %v1262_v9 = vadd.s32 1, %v5256_v52 }
 0x146   : > { %vm1716_vm8 = vcmp.eq.s32.totalorder %v5263_v22, 2  ;;  %v965_v36 = vshll.u32 %v5186_v53, %v963_v16  ;;  %v5814_v31 = vmov 2475754826   ;;  %vm1713_vm10 = vcmp.eq.s32.totalorder %v5263_v22, 0 }
 0x147   : > { %v966_v59 = vshrl.u32 %v948_v50, %v964_v38  ;;  %v969_v43 = vadd.s32 127, %v968_v30  ;;  %v1326_v40 = vshrl.u32 %v5814_v31, %v5260_v0  ;;  %v1263_v13 = vsel %vm1261_vm9, %v1262_v9, %v5256_v52 }
 0x148   : > { %v1315_v47 = vand.u32 8388607, %v1308_v42  ;;  %v1329_v46 = vshrl.u32 %v5805_v39, %v5260_v0  ;;  %v1332_v18 = vshrl.u32 %v5806_v12, %v5260_v0  ;;  %vm1712_vm11 = vcmp.lt.s32.totalorder %v5263_v22, 2 }
 0x149   : > { %v967_v53 = vor.u32 %v966_v59, %v965_v36  ;;  %v970_v15 = vshll.u32 %v969_v43, 23  ;;  %v1264_v37 = vadd.s32 %v1263_v13, %v1259_v62  ;;  %v5815_v7 = vmov 683565275  }
 0x14a   : > { %v1325_v28 = vshll.u32 %v5815_v7, %v5127_v4  ;;  %vm880_vm12 = vweird.f32 %v4461_v60  ;;  %vm894_vm13 = vcmp.lt.s32.totalorder %v4463_v1, 0  ;;  %v1328_v25 = vshll.u32 %v5814_v31, %v5127_v4 }
 0x14b   : > { %v1331_v24 = vshll.u32 %v5805_v39, %v5127_v4  ;;  %v1334_v19 = vshll.u32 %v5806_v12, %v5127_v4  ;;  %v1335_v63 = vshrl.u32 %v4269_v33, %v5260_v0  ;;  %v971_v52 = vor.u32 4788187, %v970_v15 }
 0x14c   : > { %v978_v3 = vsub.s32 4, %v5169_v8  ;;  %v1265_v16 = vadd.s32 536870912, %v1264_v37  ;;  %v1327_v50 = vor.u32 %v1326_v40, %v1325_v28  ;;  %v1330_v38 = vor.u32 %v1329_v46, %v1328_v25 }
 0x14d   : > { %v1333_v30 = vor.u32 %v1332_v18, %v1331_v24  ;;  %v1336_v62 = vor.u32 %v1335_v63, %v1334_v19  ;;  %v1338_v9 = vshrl.u32 %v5807_v23, %v5260_v0  ;;  %v972_v39 = vand.u32 2147483647, %v971_v52 }
 0x14e   : > { %v5305_v36 = vpop.eup %4078  ;;  %v974_v59 = vcvt.s32.f32 %v967_v53  ;;  %v5307_v43 = vshrl.u32 %v1265_v16, 30  ;;  %vm1343_vm14 = vcmp.lt.s32.totalorder %v5272_v54, 4  ;;  %v1316_v13 = vor.u32 8388608, %v1315_v47 }
 0x14f   : > { %v5310_v12 = vpop.eup %4080  ;;  %v888_v31 = vxor.u32 2147483648, %v5305_v36  ;;  %v1337_v40 = vshll.u32 %v4269_v33, %v5127_v4  ;;  %v1349_v46 = vsel %vm1343_vm14, %v1336_v62, 920167782  ;;  %vm1340_vm0 = vcmp.lt.s32.totalorder %v5272_v54, 1 }
 0x150   : > { %v885_v23 = vxor.u32 2147483648, %v5310_v12  ;;  %v975_v18 = vmul.f32 %v974_v59, %v972_v39  ;;  %v1267_v53 = vshll.u32 %v5307_v43, 30  ;;  %vm1342_vm1 = vcmp.lt.s32.totalorder %v5272_v54, 3 }
 0x151   : > { %v1718_v15 = vsel %vm1716_vm8, %v888_v31, %v5310_v12  ;;  %v1339_v47 = vor.u32 %v1338_v9, %v1337_v40  ;;  %v1348_v33 = vsel %vm1340_vm0, %v1327_v50, %v1330_v38  ;;  %v1350_v24 = vsel %vm1342_vm1, %v1333_v30, %v1349_v46 }
 0x152   : > { %v1715_v4 = vsel %vm1713_vm10, %v5305_v36, %v885_v23  ;;  %v976_v28 = vxor.u32 2147483648, %v975_v18  ;;  %v1268_v25 = vsub.s32 %v1264_v37, %v1267_v53  ;;  %v5816_v63 = vand.u32 2147483647, %v4463_v1 }
 0x153   : > { %v1719_v19 = vsel %vm1712_vm11, %v1715_v4, %v1718_v15  ;;  %v1324_v16 = vshrl.u32 %v5815_v7, %v5260_v0  ;;  %vm1341_vm4 = vcmp.lt.s32.totalorder %v5272_v54, 2  ;;  %v1345_v39 = vsel %vm1343_vm14, %v1333_v30, 2102212464 }
 0x154   : > { %vm5339_vm3 = vcmp.le.f32.partialorder %v5816_v63, 0.7853982  ;;  %v5348_v37 = vsel %vm880_vm12, nan, %v1719_v19  ;;  %v977_v9 = vsel %vm894_vm13, %v976_v28, %v975_v18  ;;  %v1270_v22 = vsub.s32 0, %v1268_v25 }
 0x155   : > { %3868 = vmatprep.mubr.msk.f32.mxu0 %vm2244_vm2, %v5348_v37  ;;  %v980_v0 = vsel %vm5339_vm3, %v4463_v1, %v977_v9  ;;  %v1351_v7 = vsel %vm1341_vm4, %v1348_v33, %v1350_v24  ;;  %v1352_v59 = vsel %vm1340_vm0, %v1330_v38, %v1333_v30  ;;  %v1353_v40 = vsel %vm1343_vm14, %v1339_v47, 1326507024 }
 0x156   : > { %v979_v46 = vsel %vm894_vm13, %v978_v3, %v5169_v8  ;;  %4082 = vcosq.f32 %v980_v0  ;;  %v3625_v18 = vmin.u32 %v1270_v22, %v1268_v25  ;;  %v1356_v53 = vshll.u32 %v1316_v13, 8 }
 0x157   : > { %4084 = vsinq.f32 %v980_v0  ;;  %v1344_v15 = vsel %vm1340_vm0, %v1324_v16, %v1327_v50  ;;  %v1346_v33 = vsel %vm1342_vm1, %v1330_v38, %v1345_v39  ;;  %v1354_v30 = vsel %vm1342_vm1, %v1336_v62, %v1353_v40 }
 0x158   : > { %v1272_v4 = vclz %v3625_v18  ;;  %v1355_v47 = vsel %vm1341_vm4, %v1352_v59, %v1354_v30  ;;  %v5376_v28 = vmul.u32.u64.low %v1356_v53, %v1351_v7  ;;  %v5377_v24 = vmul.u32.u64.high %v1356_v53, %v1351_v7, %v5376_v28 }
 0x159   : > { %v981_v8 = vsel %vm5339_vm3, 0, %v979_v46  ;;  %v5382_v3 = vmul.u32.u64.low %v1356_v53, %v1355_v47  ;;  %v5383_v13 = vmul.u32.u64.high %v1356_v53, %v1355_v47, %v5382_v3  ;;  %v881_v50 = vadd.s32 3, %v5143_v32 }
 0x15a   : > { %v3626_v38 = vadd.s32 4294967294, %v1272_v4  ;;  %v1347_v62 = vsel %vm1341_vm4, %v1344_v15, %v1346_v33  ;;  %v1814_v63 = vand.u32 3, %v981_v8  ;;  %v1260_v16 = vadd.s32 %v5255_v35, %v5253_v10 }
 0x15b   : > { %v882_v19 = vand.u32 3, %v881_v50  ;;  %v1366_v9 = vadd.s32 1, %v5377_v24  ;;  %v1363_v52 = vmul.u32 %v1356_v53, %v1347_v62  ;;  %vm1365_vm7 = vc.u32 %v5383_v13, %v5376_v28 }
 0x15c   : > { %vm3627_vm6 = vcmp.lt.s32.totalorder %v3626_v38, 0  ;;  %v985_v39 = vadd.s32 3, %v981_v8  ;;  %vm1815_vm10 = vcmp.lt.s32.totalorder %v1814_v63, 2  ;;  %vm1816_vm11 = vcmp.eq.s32.totalorder %v1814_v63, 0 }
 0x15d   : > { %v1275_v22 = vsel %vm3627_vm6, 0, %v3626_v38  ;;  %v1367_v7 = vsel %vm1365_vm7, %v1366_v9, %v5377_v24  ;;  %vm883_vm5 = vcmp.lt.s32.totalorder %v882_v19, 2  ;;  %vm884_vm9 = vcmp.eq.s32.totalorder %v882_v19, 0 }
 0x15e   : > { %v1276_v0 = vsub.s32 32, %v1275_v22  ;;  %v1280_v32 = vsub.s32 4294967266, %v1275_v22  ;;  %v1277_v54 = vshll.u32 %v1268_v25, %v1275_v22  ;;  %v1368_v59 = vadd.s32 %v1367_v7, %v1363_v52 }
 0x15f   : > { %vm887_vm8 = vcmp.eq.s32.totalorder %v882_v19, 2  ;;  %v886_v35 = vsel %vm884_vm9, %v5305_v36, %v885_v23  ;;  %v986_v15 = vand.u32 3, %v985_v39  ;;  %vm1819_vm13 = vcmp.eq.s32.totalorder %v1814_v63, 2 }
 0x160   : > { %v1278_v40 = vshrl.u32 %v1260_v16, %v1276_v0  ;;  %v1281_v10 = vadd.s32 127, %v1280_v32  ;;  %v889_v46 = vsel %vm887_vm8, %v888_v31, %v5310_v12  ;;  %v1369_v18 = vadd.s32 536870912, %v1368_v59  ;;  %v5417_v32 = vld [vmem:[%s5779_s8] ss:$0 sm:$0xff] }
 0x161   : > { %v890_v53 = vsel %vm883_vm5, %v886_v35, %v889_v46  ;;  %vm988_vm14 = vcmp.eq.s32.totalorder %v986_v15, 0  ;;  %vm991_vm0 = vcmp.eq.s32.totalorder %v986_v15, 2  ;;  %vm984_vm1 = vweird.f32 %v4463_v1 }
 0x162   : > { %v1279_v33 = vor.u32 %v1278_v40, %v1277_v54  ;;  %v1282_v30 = vshll.u32 %v1281_v10, 23  ;;  %v5402_v25 = vsel %vm880_vm12, nan, %v890_v53  ;;  %v5404_v47 = vshrl.u32 %v1369_v18, 30  ;;  %v2944_v53 = vld [vmem:[%s5780_s9 + $0x8] sm:$0xff] }
 0x163   : > { %v4083_v4 = vpop.eup %4082  ;;  %vm987_vm12 = vcmp.lt.s32.totalorder %v986_v15, 2  ;;  %vm1206_vm3 = vcmp.lt.s32.totalorder %v4517_v20, 0  ;;  %v5819_v7 = vand.u32 2147483647, %v4517_v20  ;;  %v2887_v35 = vadd.f32 %v5417_v32, %v4375_v26 }
 0x164   : > { %v4085_v24 = vpop.eup %4084  ;;  %v992_v8 = vxor.u32 2147483648, %v4083_v4  ;;  %v1283_v23 = vor.u32 4788187, %v1282_v30  ;;  %v1371_v12 = vshll.u32 %v5404_v47, 30  ;;  %v1286_v50 = vcvt.s32.f32 %v1279_v33 }
 0x165   : > { %v989_v36 = vxor.u32 2147483648, %v4085_v24  ;;  %vm5424_vm4 = vcmp.le.f32.partialorder %v5819_v7, 0.7853982  ;;  %v1290_v46 = vsub.s32 4, %v5307_v43  ;;  %v2888_v26 = vadd.f32 %v5417_v32, %v4423_v6 }
 0x166   : > { %v1821_v31 = vsel %vm1819_vm13, %v992_v8, %v4085_v24  ;;  %v1284_v3 = vand.u32 2147483647, %v1283_v23  ;;  %v993_v60 = vsel %vm991_vm0, %v992_v8, %v4085_v24  ;;  %v1372_v62 = vsub.s32 %v1368_v59, %v1371_v12 }
 0x167   : > { %v1818_v38 = vsel %vm1816_vm11, %v4083_v4, %v989_v36  ;;  %v990_v19 = vsel %vm988_vm14, %v4083_v4, %v989_v36  ;;  %v3715_v15 = vmul.f32 -1.442695, %v2887_v35  ;;  %v1291_v33 = vsel %vm1206_vm3, %v1290_v46, %v5307_v43 }
 0x168   : > { %v1822_v16 = vsel %vm1815_vm10, %v1818_v38, %v1821_v31  ;;  %v1287_v9 = vmul.f32 %v1286_v50, %v1284_v3  ;;  %v5409_v22 = vsel %vm987_vm12, %v990_v19, %v993_v60  ;;  %v1374_v39 = vsub.s32 0, %v1372_v62 }
 0x169   : > { %v1823_v52 = vsel %vm984_vm1, nan, %v1822_v16  ;;  %v1364_v6 = vadd.s32 %v5376_v28, %v5383_v13  ;;  %v3716_v24 = vmul.f32 -1.442695, %v2888_v26  ;;  %v2890_v8 = vadd.f32 %v5417_v32, %v4438_v29 }
 0x16a   : > { %3869 = vmatmul.mubr.msk.f32.gmra.mxu0 %vm2244_vm2, %v1823_v52  ;;  %v1288_v0 = vxor.u32 2147483648, %v1287_v9  ;;  %v3629_v63 = vmin.u32 %v1374_v39, %v1372_v62  ;;  %v2892_v31 = vadd.f32 %v5417_v32, %v4412_v55  ;;  %v2893_v60 = vadd.f32 %v5417_v32, %v4451_v48 }
 0x16b   : > { %3905 = vmatprep.mubr.msk.f32.mxu0 %vm2244_vm2, %v4827_v51  ;;  %v2945_v51 = vld [vmem:[%s5780_s9 + $0x10] sm:$0xff]  ;;  %v3718_v29 = vmul.f32 -1.442695, %v2890_v8  ;;  %v2894_v48 = vadd.f32 %v5417_v32, %v4465_v2  ;;  %vm1296_vm8 = vweird.f32 %v4517_v20  ;;  %vm1310_vm10 = vcmp.lt.s32.totalorder %v4592_v61, 0 }
 0x16c   : > { %v1289_v59 = vsel %vm1206_vm3, %v1288_v0, %v1287_v9  ;;  %v1376_v10 = vclz %v3629_v63  ;;  %v3720_v16 = vmul.f32 -1.442695, %v2892_v31  ;;  %v3721_v39 = vmul.f32 -1.442695, %v2893_v60 }
 0x16d   : > { %v1292_v40 = vsel %vm5424_vm4, %v4517_v20, %v1289_v59  ;;  %vm5497_vm11 = vcmp.le.f32.partialorder %v1308_v42, 0.7853982  ;;  %v1394_v42 = vsub.s32 4, %v5404_v47  ;;  %vm1400_vm12 = vweird.f32 %v4592_v61  ;;  %v3743_v20 = vld [vmem:[%s5780_s9 + $0x38] sm:$0xff] }
 0x16e   : > { %4086 = vcosq.f32 %v1292_v40  ;;  %3906 = vmatmul.mubr.msk.f32.vlgmr.msra.gmra.mxu0 %vm2244_vm2, %v5199_v11  ;;  %v3630_v18 = vadd.s32 4294967294, %v1376_v10  ;;  %v2943_v11 = vld [vmem:[%s5780_s9] sm:$0xff] }
 0x16f   : > { %4088 = vsinq.f32 %v1292_v40  ;;  %3908 = vmatprep.mubr.msk.f32.mxu0 %vm2244_vm2, %v5348_v37  ;;  %3938 = vmatpush3.msra.mxu0 %v5250_v14  ;;  %v2889_v37 = vadd.f32 %v5417_v32, %v4432_v21  ;;  %v2891_v21 = vadd.f32 %v5417_v32, %v4385_v34  ;;  %v3722_v40 = vmul.f32 -1.442695, %v2894_v48  ;;  %v2567_v48 = vld [vmem:[%s5776_s5 + $0x8] sm:$0xff] }
 0x170   : > { %3939 = vmatprep.subr.mxu0 %v2945_v51  ;;  %vm3631_vm6 = vcmp.lt.s32.totalorder %v3630_v18, 0  ;;  %4090 = vpow2.f32 %v3715_v15 }
 0x171   : > { %3940 = vmatpush3.msra.mxu0 %v2945_v51  ;;  %v1379_v14 = vsel %vm3631_vm6, 0, %v3630_v18  ;;  %v3717_v28 = vmul.f32 -1.442695, %v2889_v37  ;;  %v3719_v12 = vmul.f32 -1.442695, %v2891_v21  ;;  %4092 = vpow2.f32 %v3716_v24 }
 0x172   : > { %3909 = vmatmul.mubr.msk.f32.gmra.mxu0 %vm2244_vm2, %v1823_v52  ;;  %3941 = vmatprep.subr.mxu0 %v2944_v53  ;;  %v1380_v30 = vsub.s32 32, %v1379_v14  ;;  %v1384_v4 = vsub.s32 4294967266, %v1379_v14  ;;  %v1381_v23 = vshll.u32 %v1372_v62, %v1379_v14 }
 0x173   : > { %3911 = vmatprep.mubr.msk.f32.mxu0 %vm2244_vm2, %v4916_v58  ;;  %3942 = vmatpush3.msra.mxu0 %v2944_v53  ;;  %v5468_v58 = vsel %vm5424_vm4, 0, %v1291_v33  ;;  %4094 = vpow2.f32 %v3717_v28  ;;  %v1395_v53 = vsel %vm1310_vm10, %v1394_v42, %v5404_v47 }
 0x174   : > { %3943 = vmatprep.subr.mxu0 %v2943_v11  ;;  %v1382_v36 = vshrl.u32 %v1364_v6, %v1380_v30  ;;  %v1385_v43 = vadd.s32 127, %v1384_v4  ;;  %v2123_v3 = vand.u32 3, %v5468_v58  ;;  %4096 = vpow2.f32 %v3719_v12 }
 0x175   : > { %3944 = vmatpush3.msra.mxu0 %v2943_v11  ;;  %4098 = vpow2.f32 %v3718_v29  ;;  %v1397_v14 = vsel %vm5497_vm11, 0, %v1395_v53  ;;  %v1297_v31 = vadd.s32 3, %v5468_v58 }
 0x176   : > { %3912 = vmatmul.mubr.msk.f32.gmra.mxu0 %vm2244_vm2, %v5046_v17  ;;  %v1383_v13 = vor.u32 %v1382_v36, %v1381_v23  ;;  %v1386_v34 = vshll.u32 %v1385_v43, 23  ;;  %vm2128_vm7 = vcmp.eq.s32.totalorder %v2123_v3, 2  ;;  %vm2125_vm5 = vcmp.eq.s32.totalorder %v2123_v3, 0 }
 0x177   : > { %vm2124_vm9 = vcmp.lt.s32.totalorder %v2123_v3, 2  ;;  %4100 = vpow2.f32 %v3720_v16  ;;  %v2226_v4 = vand.u32 3, %v1397_v14  ;;  %v1298_v58 = vand.u32 3, %v1297_v31  ;;  %v2568_v16 = vld [vmem:[%s5776_s5 + $0x10] sm:$0xff] }
 0x178   : > { %v1387_v50 = vor.u32 4788187, %v1386_v34  ;;  %v1390_v17 = vcvt.s32.f32 %v1383_v13  ;;  %4102 = vpow2.f32 %v3721_v39  ;;  %v1193_v34 = vadd.s32 3, %v4928_v49 }
 0x179   : > { %vm2231_vm13 = vcmp.eq.s32.totalorder %v2226_v4, 2  ;;  %vm2228_vm14 = vcmp.eq.s32.totalorder %v2226_v4, 0  ;;  %vm2227_vm0 = vcmp.lt.s32.totalorder %v2226_v4, 2  ;;  %vm1300_vm6 = vcmp.eq.s32.totalorder %v1298_v58, 0 }
 0x17a   : > { %v1388_v62 = vand.u32 2147483647, %v1387_v50  ;;  %v1194_v49 = vand.u32 3, %v1193_v34 }
 0x17b   : > { %v5477_v38 = vpop.eup %4086 }
 0x17c   : > { %v5479_v19 = vpop.eup %4088  ;;  %v1304_v9 = vxor.u32 2147483648, %v5477_v38  ;;  %v1391_v52 = vmul.f32 %v1390_v17, %v1388_v62  ;;  %v1401_v62 = vadd.s32 3, %v1397_v14  ;;  %vm1196_vm3 = vcmp.eq.s32.totalorder %v1194_v49, 0 }
 0x17d   : > { %v1301_v55 = vxor.u32 2147483648, %v5479_v19  ;;  %v4091_v51 = vpop.eup %4090  ;;  %vm1199_vm4 = vcmp.eq.s32.totalorder %v1194_v49, 2 }
 0x17e   : > { %v2130_v0 = vsel %vm2128_vm7, %v1304_v9, %v5479_v19  ;;  %v1392_v7 = vxor.u32 2147483648, %v1391_v52  ;;  %v4093_v35 = vpop.eup %4092  ;;  %v2919_v46 = vadd.f32 1.0, %v4091_v51  ;;  %vm1303_vm7 = vcmp.eq.s32.totalorder %v1298_v58, 2 }
 0x17f   : > { %v2127_v63 = vsel %vm2125_vm5, %v5477_v38, %v1301_v55  ;;  %v2920_v11 = vadd.f32 1.0, %v4093_v35  ;;  %vm1195_vm5 = vcmp.lt.s32.totalorder %v1194_v49, 2 }
 0x180   : > { %v2131_v54 = vsel %vm2124_vm9, %v2127_v63, %v2130_v0  ;;  %v1393_v59 = vsel %vm1310_vm10, %v1392_v7, %v1391_v52  ;;  %v4095_v18 = vpop.eup %4094  ;;  %v1402_v52 = vand.u32 3, %v1401_v62  ;;  %v5824_v0 = vxor.u32 2147483648, %v5014_v56 }
 0x181   : > { %v2132_v2 = vsel %vm1296_vm8, nan, %v2131_v54  ;;  %v1396_v10 = vsel %vm5497_vm11, %v4592_v61, %v1393_v59  ;;  %v4097_v26 = vpop.eup %4096  ;;  %v2921_v37 = vadd.f32 1.0, %v4095_v18  ;;  %v5825_v7 = vxor.u32 2147483648, %v5010_v57  ;;  %v3742_v61 = vld [vmem:[%s5780_s9 + $0x30] sm:$0xff] }
 0x182   : > { %3874 = vmatprep.mubr.msk.f32.mxu1 %vm2244_vm2, %v2132_v2  ;;  %3914 = vmatprep.mubr.msk.f32.mxu0 %vm2244_vm2, %v2132_v2  ;;  %4104 = vcosq.f32 %v1396_v10  ;;  %v4099_v15 = vpop.eup %4098  ;;  %v2923_v33 = vadd.f32 1.0, %v4097_v26  ;;  %v1198_v63 = vsel %vm1196_vm3, %v5010_v57, %v5824_v0  ;;  %v1305_v2 = vsel %vm1303_vm7, %v1304_v9, %v5479_v19 }
 0x183   : > { %4106 = vsinq.f32 %v1396_v10  ;;  %v2922_v30 = vadd.f32 1.0, %v4099_v15  ;;  %v1201_v54 = vsel %vm1199_vm4, %v5825_v7, %v5014_v56  ;;  %v995_v59 = vsel %vm984_vm1, nan, %v5409_v22 }
 0x184   : > { %4108 = vpow2.f32 %v3722_v40  ;;  %v4101_v6 = vpop.eup %4100  ;;  %v1202_v56 = vsel %vm1195_vm5, %v1198_v63, %v1201_v54  ;;  %vm1299_vm9 = vcmp.lt.s32.totalorder %v1298_v58, 2  ;;  %vm1404_vm10 = vcmp.eq.s32.totalorder %v1402_v52, 0 }
 0x185   : > { %4110 = vrcp.f32 %v2919_v46  ;;  %v4103_v21 = vpop.eup %4102  ;;  %v2924_v23 = vadd.f32 1.0, %v4101_v6  ;;  %vm1407_vm11 = vcmp.eq.s32.totalorder %v1402_v52, 2  ;;  %v1203_v19 = vsel %vm1192_vm15, nan, %v1202_v56 }
 0x186   : > { %4112 = vrcp.f32 %v2920_v11  ;;  %v2925_v28 = vadd.f32 1.0, %v4103_v21  ;;  %vm1403_vm1 = vcmp.lt.s32.totalorder %v1402_v52, 2  ;;  %vm3525_vm15 = vcmask 23552  }
 0x187   : > { %4114 = vrcp.f32 %v2921_v37 }
 0x188   : > { %4116 = vrcp.f32 %v2923_v33 }
 0x189   : > { %4118 = vrcp.f32 %v2922_v30 }
 0x18a   : > { %4120 = vrcp.f32 %v2924_v23  ;;  %v3723_v23 = vld [vmem:[%s5781_s10] ss:$0 sm:$0xff] }
 0x18b   : > { %4122 = vrcp.f32 %v2925_v28  ;;  %v5632_v28 = vld [vmem:[%s5775_s4] ss:$0 sm:$0xff] }
 0x18f   : > { %v5514_v24 = vpop.eup %4104 }
 0x190   : > { %v5516_v8 = vpop.eup %4106  ;;  %v1408_v47 = vxor.u32 2147483648, %v5514_v24 }
 0x191   : > { %v1405_v36 = vxor.u32 2147483648, %v5516_v8  ;;  %v4109_v43 = vpop.eup %4108 }
 0x192   : > { %v2233_v13 = vsel %vm2231_vm13, %v1408_v47, %v5516_v8  ;;  %v2926_v3 = vadd.f32 1.0, %v4109_v43  ;;  %v4111_v60 = vpop.eup %4110 }
 0x193   : > { %v2230_v12 = vsel %vm2228_vm14, %v5514_v24, %v1405_v36  ;;  %v4113_v17 = vpop.eup %4112  ;;  %v1406_v22 = vsel %vm1404_vm10, %v5514_v24, %v1405_v36 }
 0x194   : > { %v2234_v29 = vsel %vm2227_vm0, %v2230_v12, %v2233_v13  ;;  %4124 = vrcp.f32 %v2926_v3  ;;  %v4115_v39 = vpop.eup %4114 }
 0x195   : > { %v2235_v50 = vsel %vm1400_vm12, nan, %v2234_v29  ;;  %v4117_v32 = vpop.eup %4116 }
 0x196   : > { %3875 = vmatmul.mubr.msk.f32.gmra.mxu1 %vm2244_vm2, %v2235_v50  ;;  %3915 = vmatmul.mubr.msk.f32.gmra.mxu0 %vm2244_vm2, %v2235_v50  ;;  %v4119_v57 = vpop.eup %4118 }
 0x197   : > { %3885 = vmatprep.mubr.msk.f32.mxu1 %vm2244_vm2, %v4823_v41  ;;  %3945 = vmatprep.mubr.msk.f32.mxu0 %vm2244_vm2, %v4111_v60  ;;  %v4121_v9 = vpop.eup %4120 }
 0x198   : > { %v4123_v51 = vpop.eup %4122 }
 0x19a   : > { %3886 = vmatmul.mubr.msk.f32.vlgmr.msra.gmra.mxu1 %vm2244_vm2, %v5195_v5  ;;  %3946 = vmatmul.mubr.msk.f32.vlgmr.msra.gmra.mxu0 %vm2244_vm2, %v4113_v17 }
 0x19b   : > { %3918 = vmatpush3.msra.mxu1 %v5095_v44  ;;  %3888 = vmatprep.mubr.msk.f32.mxu1 %vm2244_vm2, %v5402_v25  ;;  %v1302_v44 = vsel %vm1300_vm6, %v5477_v38, %v1301_v55  ;;  %v2566_v55 = vld [vmem:[%s5776_s5] sm:$0xff]  ;;  %v1409_v38 = vsel %vm1407_vm11, %v1408_v47, %v5516_v8 }
 0x19c   : > { %3919 = vmatprep.subr.mxu1 %v2568_v16  ;;  %3948 = vmatprep.mubr.msk.f32.mxu0 %vm2244_vm2, %v4115_v39  ;;  %v1306_v1 = vsel %vm1299_vm9, %v1302_v44, %v1305_v2  ;;  %v1410_v10 = vsel %vm1403_vm1, %v1406_v22, %v1409_v38 }
 0x19d   : > { %3920 = vmatpush3.msra.mxu1 %v2568_v16  ;;  %v1307_v40 = vsel %vm1296_vm8, nan, %v1306_v1  ;;  %v1411_v27 = vsel %vm1400_vm12, nan, %v1410_v10 }
 0x19e   : > { %3889 = vmatmul.mubr.msk.f32.gmra.mxu1 %vm2244_vm2, %v995_v59  ;;  %3921 = vmatprep.subr.mxu1 %v2567_v48 }
 0x19f   : > { %3891 = vmatprep.mubr.msk.f32.mxu1 %vm2244_vm2, %v4912_v45  ;;  %3949 = vmatmul.mubr.msk.f32.gmra.mxu0 %vm2244_vm2, %v4119_v57 }
 0x1a0   : > { %3922 = vmatpush3.msra.mxu1 %v2567_v48  ;;  %3951 = vmatprep.mubr.msk.f32.mxu0 %vm2244_vm2, %v4117_v32 }
 0x1a1   : > { %3923 = vmatprep.subr.mxu1 %v2566_v55  ;;  %v4125_v42 = vpop.eup %4124 }
 0x1a2   : > { %3892 = vmatmul.mubr.msk.f32.gmra.mxu1 %vm2244_vm2, %v1203_v19 }
 0x1a3   : > { %3894 = vmatprep.mubr.msk.f32.mxu1 %vm2244_vm2, %v1307_v40  ;;  %3952 = vmatmul.mubr.msk.f32.gmra.mxu0 %vm2244_vm2, %v4121_v9 }
 0x1a4   : > { %3924 = vmatpush3.msra.mxu1 %v2566_v55  ;;  %3954 = vmatprep.mubr.msk.f32.mxu0 %vm2244_vm2, %v4123_v51 }
 0x1a5   : > { %3957 = vmatprep.subr.mxu1 %v3743_v20 }
 0x1a6   : > { %3895 = vmatmul.mubr.msk.f32.gmra.mxu1 %vm2244_vm2, %v1411_v27 }
 0x1a7   : > { %3925 = vmatprep.mubr.msk.f32.mxu1 %vm2244_vm2, %v4823_v41  ;;  %3955 = vmatmul.mubr.msk.f32.gmra.mxu0 %vm2244_vm2, %v4125_v42  ;;  %v3741_v41 = vld [vmem:[%s5780_s9 + $0x28] sm:$0xff] }
 0x1aa   : > { %3926 = vmatmul.mubr.msk.f32.vlgmr.msra.gmra.mxu1 %vm2244_vm2, %v5195_v5 }
 0x1ab   : > { %3928 = vmatprep.mubr.msk.f32.mxu1 %vm2244_vm2, %v5402_v25  ;;  %3958 = vmatpush3.msra.mxu1 %v3743_v20 }
 0x1ac   : > { %3959 = vmatprep.subr.mxu1 %v3742_v61 }
 0x1ad   : > { %3960 = vmatpush3.msra.mxu1 %v3742_v61 }
 0x1ae   : > { %3929 = vmatmul.mubr.msk.f32.gmra.mxu1 %vm2244_vm2, %v995_v59  ;;  %3961 = vmatprep.subr.mxu1 %v3741_v41 }
 0x1af   : > { %3931 = vmatprep.mubr.msk.f32.mxu1 %vm2244_vm2, %v4912_v45  ;;  %v3740_v45 = vld [vmem:[%s5780_s9 + $0x20] sm:$0xff]  ;;  %3962 = vmatpush3.msra.mxu1 %v3741_v41 }
 0x1b0   : > { %3963 = vmatprep.subr.mxu1 %v3740_v45 }
 0x1b1   : > { %3964 = vmatpush3.msra.mxu1 %v3740_v45 }
 0x1b2   : > { %3932 = vmatmul.mubr.msk.f32.gmra.mxu1 %vm2244_vm2, %v1203_v19 }
 0x1b3   : > { %3934 = vmatprep.mubr.msk.f32.mxu1 %vm2244_vm2, %v1307_v40 }
 0x1b6   : > { %3935 = vmatmul.mubr.msk.f32.gmra.mxu1 %vm2244_vm2, %v1411_v27 }
 0x1e2   : > { %v3873_v37 = vpop.f32.mrf.mxu1 }
 0x1e4   : > { %v2355_v33 = vpop.f32.mrf.mxu1 }
 0x1fc   : > { %v3867_v5 = vpop.f32.mrf.mxu0 }
 0x1fe   : > { %v2335_v25 = vpop.f32.mrf.mxu0 }
 0x22a   : > { %v3870_v35 = vpop.f32.mrf.mxu0 }
 0x22c   : > { %v2345_v46 = vpop.f32.mrf.mxu0 }
 0x22e   : > { %v5610_v18 = vpop.f32.mrf.mxu0 }
 0x230   : > { %v5612_v53 = vpop.f32.mrf.mxu0 }
 0x232   : > { %v5614_v26 = vpop.f32.mrf.mxu0 }
 0x234   : > { %v5616_v11 = vpop.f32.mrf.mxu0 }
 0x236   : > { %v5618_v15 = vpop.f32.mrf.mxu0 }
 0x238   : > { %v5620_v14 = vpop.f32.mrf.mxu0 }
 0x256   : > { %v3876_v6 = vpop.f32.mrf.mxu1  ;;  %v5622_v30 = vpop.f32.mrf.mxu0 }
 0x258   : > { %v2365_v4 = vpop.f32.mrf.mxu1  ;;  %v5624_v21 = vpop.f32.mrf.mxu0 }
 0x25a   : > { %v3887_v24 = vpop.f32.mrf.mxu1  ;;  %v3947_v8 = vpop.f32.mrf.mxu0 }
 0x25b   : > { %v2470_v43 = vadd.f32 %v3887_v24, %v3867_v5  ;;  %v3050_v34 = vadd.f32 %v3947_v8, %v3723_v23 }
 0x25c   : > { %v2464_v47 = vpop.f32.mrf.mxu1  ;;  %v3044_v36 = vpop.f32.mrf.mxu0 }
 0x25d   : > { %v2465_v31 = vadd.f32 %v2464_v47, %v2335_v25  ;;  %v2511_v3 = vadd.f32 %v5632_v28, %v2470_v43  ;;  %v3733_v49 = vmul.f32 -1.442695, %v3050_v34  ;;  %v3045_v62 = vadd.f32 %v3723_v23, %v3044_v36  ;;  %v3705_v43 = vld [vmem:[%s5777_s6] ss:$0 sm:$0xff] }
 0x25e   : > { %v3890_v13 = vpop.f32.mrf.mxu1 }
 0x25f   : > { %v3950_v12 = vpop.f32.mrf.mxu0  ;;  %v2510_v17 = vadd.f32 %v5632_v28, %v2465_v31  ;;  %v3682_v52 = vmul.f32 -1.442695, %v2511_v3  ;;  %v2480_v39 = vadd.f32 %v3890_v13, %v3870_v35  ;;  %4126 = vpow2.f32 %v3733_v49 }
 0x260   : > { %v2474_v29 = vpop.f32.mrf.mxu1  ;;  %v3732_v0 = vmul.f32 -1.442695, %v3045_v62  ;;  %v3060_v44 = vadd.f32 %v3950_v12, %v3723_v23 }
 0x261   : > { %v3054_v50 = vpop.f32.mrf.mxu0  ;;  %v2475_v63 = vadd.f32 %v2474_v29, %v2345_v46  ;;  %v3681_v54 = vmul.f32 -1.442695, %v2510_v17  ;;  %4128 = vpow2.f32 %v3682_v52  ;;  %v2513_v32 = vadd.f32 %v5632_v28, %v2480_v39 }
 0x262   : > { %v3893_v60 = vpop.f32.mrf.mxu1  ;;  %v3055_v57 = vadd.f32 %v3723_v23, %v3054_v50  ;;  %4130 = vpow2.f32 %v3732_v0  ;;  %v3735_v38 = vmul.f32 -1.442695, %v3060_v44 }
 0x263   : > { %v3953_v58 = vpop.f32.mrf.mxu0  ;;  %v2490_v59 = vadd.f32 %v3893_v60, %v3873_v37  ;;  %v2512_v55 = vadd.f32 %v5632_v28, %v2475_v63  ;;  %4132 = vpow2.f32 %v3681_v54  ;;  %v3684_v40 = vmul.f32 -1.442695, %v2513_v32 }
 0x264   : > { %v2484_v16 = vpop.f32.mrf.mxu1  ;;  %v3070_v19 = vadd.f32 %v3953_v58, %v3723_v23  ;;  %v3734_v27 = vmul.f32 -1.442695, %v3055_v57  ;;  %4134 = vpow2.f32 %v3735_v38 }
 0x265   : > { %v3064_v7 = vpop.f32.mrf.mxu0  ;;  %v2485_v1 = vadd.f32 %v2484_v16, %v2355_v33  ;;  %v2515_v10 = vadd.f32 %v5632_v28, %v2490_v59  ;;  %v3683_v61 = vmul.f32 -1.442695, %v2512_v55  ;;  %4136 = vpow2.f32 %v3684_v40 }
 0x266   : > { %v3896_v48 = vpop.f32.mrf.mxu1  ;;  %v3065_v42 = vadd.f32 %v3723_v23, %v3064_v7  ;;  %v3737_v5 = vmul.f32 -1.442695, %v3070_v19  ;;  %4138 = vpow2.f32 %v3734_v27 }
 0x267   : > { %v3956_v22 = vpop.f32.mrf.mxu0  ;;  %v2500_v51 = vadd.f32 %v3896_v48, %v3876_v6  ;;  %v2514_v41 = vadd.f32 %v5632_v28, %v2485_v1  ;;  %v3686_v37 = vmul.f32 -1.442695, %v2515_v10  ;;  %4140 = vpow2.f32 %v3683_v61 }
 0x268   : > { %v2494_v2 = vpop.f32.mrf.mxu1  ;;  %v3080_v35 = vadd.f32 %v3956_v22, %v3723_v23  ;;  %v3736_v24 = vmul.f32 -1.442695, %v3065_v42  ;;  %4142 = vpow2.f32 %v3737_v5 }
 0x269   : > { %v3074_v45 = vpop.f32.mrf.mxu0  ;;  %v2495_v25 = vadd.f32 %v2494_v2, %v2365_v4  ;;  %v2517_v33 = vadd.f32 %v5632_v28, %v2500_v51  ;;  %v3685_v36 = vmul.f32 -1.442695, %v2514_v41  ;;  %4144 = vpow2.f32 %v3686_v37 }
 0x26a   : > { %v3927_v56 = vpop.f32.mrf.mxu1  ;;  %v3075_v8 = vadd.f32 %v3723_v23, %v3074_v45  ;;  %v3739_v34 = vmul.f32 -1.442695, %v3080_v35  ;;  %4146 = vpow2.f32 %v3736_v24 }
 0x26b   : > { %v2751_v6 = vadd.f32 %v3927_v56, %v5610_v18  ;;  %v2516_v4 = vadd.f32 %v5632_v28, %v2495_v25  ;;  %v3688_v31 = vmul.f32 -1.442695, %v2517_v33  ;;  %4148 = vpow2.f32 %v3685_v36 }
 0x26c   : > { %v2745_v9 = vpop.f32.mrf.mxu1  ;;  %v4127_v13 = vpop.eup %4126  ;;  %v3738_v23 = vmul.f32 -1.442695, %v3075_v8  ;;  %4150 = vpow2.f32 %v3739_v34 }
 0x26d   : > { %v2746_v29 = vadd.f32 %v2745_v9, %v5612_v53  ;;  %v2792_v18 = vadd.f32 %v3705_v43, %v2751_v6  ;;  %v3108_v49 = vadd.f32 1.0, %v4127_v13  ;;  %v3687_v17 = vmul.f32 -1.442695, %v2516_v4 }
 0x26e   : > { %v3930_v20 = vpop.f32.mrf.mxu1  ;;  %v4129_v3 = vpop.eup %4128  ;;  %4152 = vpow2.f32 %v3688_v31 }
 0x26f   : > { %v2761_v50 = vadd.f32 %v3930_v20, %v5614_v26  ;;  %v4131_v58 = vpop.eup %4130  ;;  %v2543_v39 = vadd.f32 1.0, %v4129_v3  ;;  %v2791_v53 = vadd.f32 %v3705_v43, %v2746_v29  ;;  %v3707_v0 = vmul.f32 -1.442695, %v2792_v18 }
 0x270   : > { %v2755_v46 = vpop.f32.mrf.mxu1  ;;  %v4133_v52 = vpop.eup %4132  ;;  %4154 = vpow2.f32 %v3738_v23  ;;  %v3107_v7 = vadd.f32 1.0, %v4131_v58 }
 0x271   : > { %v2756_v62 = vadd.f32 %v2755_v46, %v5616_v11  ;;  %v2794_v26 = vadd.f32 %v3705_v43, %v2761_v50  ;;  %4156 = vrcp.f32 %v3108_v49  ;;  %v2542_v44 = vadd.f32 1.0, %v4133_v52  ;;  %v4135_v2 = vpop.eup %4134 }
 0x272   : > { %v3933_v47 = vpop.f32.mrf.mxu1  ;;  %4158 = vpow2.f32 %v3687_v17  ;;  %v3706_v32 = vmul.f32 -1.442695, %v2791_v53  ;;  %v4137_v57 = vpop.eup %4136  ;;  %v3110_v42 = vadd.f32 1.0, %v4135_v2 }
 0x273   : > { %v2771_v28 = vadd.f32 %v3933_v47, %v5618_v15  ;;  %v2793_v11 = vadd.f32 %v3705_v43, %v2756_v62  ;;  %4160 = vrcp.f32 %v2543_v39  ;;  %v4139_v55 = vpop.eup %4138  ;;  %v2545_v61 = vadd.f32 1.0, %v4137_v57 }
 0x274   : > { %v2765_v12 = vpop.f32.mrf.mxu1  ;;  %4162 = vpow2.f32 %v3707_v0  ;;  %v4141_v22 = vpop.eup %4140  ;;  %v3109_v45 = vadd.f32 1.0, %v4139_v55 }
 0x275   : > { %v2766_v48 = vadd.f32 %v2765_v12, %v5620_v14  ;;  %v2796_v15 = vadd.f32 %v3705_v43, %v2771_v28  ;;  %v3709_v14 = vmul.f32 -1.442695, %v2794_v26  ;;  %4164 = vrcp.f32 %v3107_v7  ;;  %v4143_v19 = vpop.eup %4142 }
 0x276   : > { %v3936_v60 = vpop.f32.mrf.mxu1  ;;  %v3708_v1 = vmul.f32 -1.442695, %v2793_v11  ;;  %4166 = vrcp.f32 %v2542_v44  ;;  %v4145_v9 = vpop.eup %4144  ;;  %v2544_v25 = vadd.f32 1.0, %v4141_v22  ;;  %v3112_v46 = vadd.f32 1.0, %v4143_v19 }
 0x277   : > { %v2781_v63 = vadd.f32 %v3936_v60, %v5622_v30  ;;  %v2795_v59 = vadd.f32 %v3705_v43, %v2766_v48  ;;  %v3711_v38 = vmul.f32 -1.442695, %v2796_v15  ;;  %4168 = vpow2.f32 %v3706_v32  ;;  %v4147_v10 = vpop.eup %4146 }
 0x278   : > { %v2775_v16 = vpop.f32.mrf.mxu1  ;;  %4170 = vpow2.f32 %v3709_v14  ;;  %v4149_v27 = vpop.eup %4148  ;;  %v2547_v33 = vadd.f32 1.0, %v4145_v9  ;;  %v3111_v8 = vadd.f32 1.0, %v4147_v10 }
 0x279   : > { %v2776_v54 = vadd.f32 %v2775_v16, %v5624_v21  ;;  %v2798_v56 = vadd.f32 %v3705_v43, %v2781_v63  ;;  %v3710_v21 = vmul.f32 -1.442695, %v2795_v59  ;;  %4172 = vpow2.f32 %v3708_v1  ;;  %v4151_v20 = vpop.eup %4150 }
 0x27a   : > { %4174 = vpow2.f32 %v3711_v38  ;;  %v2546_v29 = vadd.f32 1.0, %v4149_v27  ;;  %v3114_v17 = vadd.f32 1.0, %v4151_v20 }
 0x27b   : > { %v2797_v30 = vadd.f32 %v3705_v43, %v2776_v54  ;;  %v3713_v40 = vmul.f32 -1.442695, %v2798_v56  ;;  %4176 = vpow2.f32 %v3710_v21  ;;  %v4153_v41 = vpop.eup %4152 }
 0x27c   : > { %v2549_v7 = vadd.f32 1.0, %v4153_v41 }
 0x27d   : > { %v3712_v51 = vmul.f32 -1.442695, %v2797_v30  ;;  %4178 = vpow2.f32 %v3713_v40  ;;  %v4155_v5 = vpop.eup %4154 }
 0x27e   : > { %v5653_v35 = vpop.eup %4156  ;;  %v3113_v43 = vadd.f32 1.0, %v4155_v5 }
 0x27f   : > { %4180 = vpow2.f32 %v3712_v51  ;;  %v4159_v37 = vpop.eup %4158  ;;  %v3132_v15 = vsub.f32 1.0, %v5653_v35 }
 0x280   : > { %4182 = vrcp.f32 %v3110_v42  ;;  %v5655_v24 = vpop.eup %4160  ;;  %v2548_v16 = vadd.f32 1.0, %v4159_v37 }
 0x281   : > { %4184 = vrcp.f32 %v2545_v61  ;;  %v4163_v6 = vpop.eup %4162  ;;  %v3140_v22 = vmul.f32 %v5655_v24, %v3132_v15 }
 0x282   : > { %4186 = vrcp.f32 %v3109_v45  ;;  %v4165_v47 = vpop.eup %4164  ;;  %v2824_v36 = vadd.f32 1.0, %v4163_v6 }
 0x283   : > { %4188 = vrcp.f32 %v2544_v25  ;;  %v5657_v13 = vpop.eup %4166  ;;  %v3131_v54 = vsub.f32 1.0, %v4165_v47 }
 0x284   : > { %4190 = vrcp.f32 %v3112_v46  ;;  %v4169_v4 = vpop.eup %4168 }
 0x285   : > { %4192 = vrcp.f32 %v2547_v33  ;;  %v4171_v34 = vpop.eup %4170  ;;  %v2823_v12 = vadd.f32 1.0, %v4169_v4  ;;  %v3139_v56 = vmul.f32 %v5657_v13, %v3131_v54 }
 0x286   : > { %4194 = vrcp.f32 %v2824_v36  ;;  %v4173_v31 = vpop.eup %4172  ;;  %v2826_v3 = vadd.f32 1.0, %v4171_v34 }
 0x287   : > { %4196 = vrcp.f32 %v3111_v8  ;;  %v4175_v18 = vpop.eup %4174  ;;  %v2825_v23 = vadd.f32 1.0, %v4173_v31 }
 0x288   : > { %4198 = vrcp.f32 %v3113_v43  ;;  %v4177_v50 = vpop.eup %4176  ;;  %v2828_v60 = vadd.f32 1.0, %v4175_v18 }
 0x289   : > { %4200 = vrcp.f32 %v2823_v12  ;;  %v2827_v62 = vadd.f32 1.0, %v4177_v50  ;;  %v3388_v50 = vld [vmem:[%s5782_s11 + $0x18] sm:$0xff] }
 0x28a   : > { %4202 = vrcp.f32 %v2826_v3  ;;  %v4179_v49 = vpop.eup %4178  ;;  %3977 = vmatprep.subr.mxu0 %v3388_v50 }
 0x28b   : > { %4204 = vrcp.f32 %v2825_v23  ;;  %v2830_v53 = vadd.f32 1.0, %v4179_v49  ;;  %3978 = vmatpush3.msra.mxu0 %v3388_v50  ;;  %v3386_v49 = vld [vmem:[%s5782_s11 + $0x8] sm:$0xff] }
 0x28c   : > { %v4181_v58 = vpop.eup %4180  ;;  %4206 = vrcp.f32 %v2546_v29 }
 0x28d   : > { %v4183_v28 = vpop.eup %4182  ;;  %4208 = vrcp.f32 %v2827_v62  ;;  %v2829_v52 = vadd.f32 1.0, %v4181_v58  ;;  %v3385_v62 = vld [vmem:[%s5782_s11] sm:$0xff] }
 0x28e   : > { %v5659_v39 = vpop.eup %4184  ;;  %4210 = vrcp.f32 %v2828_v60  ;;  %v3134_v38 = vsub.f32 1.0, %v4183_v28  ;;  %v3387_v60 = vld [vmem:[%s5782_s11 + $0x10] sm:$0xff]  ;;  %v3745_v58 = vld [vmem:[%s5781_s10 + $0x1] ss:$0 sm:$0xff] }
 0x28f   : > { %v4187_v48 = vpop.eup %4186  ;;  %4212 = vrcp.f32 %v2829_v52  ;;  %3979 = vmatprep.subr.mxu0 %v3387_v60 }
 0x290   : > { %v5661_v0 = vpop.eup %4188  ;;  %4214 = vrcp.f32 %v3114_v17  ;;  %v3133_v32 = vsub.f32 1.0, %v4187_v48  ;;  %v3142_v25 = vmul.f32 %v5659_v39, %v3134_v38  ;;  %3980 = vmatpush3.msra.mxu0 %v3387_v60 }
 0x291   : > { %v4191_v26 = vpop.eup %4190  ;;  %4216 = vrcp.f32 %v2548_v16  ;;  %3981 = vmatprep.subr.mxu0 %v3386_v49 }
 0x292   : > { %v5663_v63 = vpop.eup %4192  ;;  %4218 = vrcp.f32 %v2830_v53  ;;  %v3141_v9 = vmul.f32 %v5661_v0, %v3133_v32  ;;  %3982 = vmatpush3.msra.mxu0 %v3386_v49 }
 0x293   : > { %v5665_v11 = vpop.eup %4194  ;;  %4220 = vrcp.f32 %v2549_v7  ;;  %3983 = vmatprep.subr.mxu0 %v3385_v62 }
 0x294   : > { %v4197_v44 = vpop.eup %4196  ;;  %v3148_v57 = vmul.f32 %v5665_v11, %v5653_v35  ;;  %v3136_v35 = vsub.f32 1.0, %v4191_v26  ;;  %3984 = vmatpush3.msra.mxu0 %v3385_v62 }
 0x295   : > { %v4199_v2 = vpop.eup %4198  ;;  %v3135_v1 = vsub.f32 1.0, %v4197_v44 }
 0x296   : > { %v5668_v59 = vpop.eup %4200  ;;  %v3156_v51 = vadd.f32 %v3148_v57, %v3140_v22  ;;  %v3137_v45 = vsub.f32 1.0, %v4199_v2  ;;  %v3144_v4 = vmul.f32 %v5663_v63, %v3136_v35 }
 0x297   : > { %v5672_v14 = vpop.eup %4202  ;;  %v3147_v55 = vmul.f32 %v5668_v59, %v4165_v47 }
 0x298   : > { %v5676_v30 = vpop.eup %4204  ;;  %v3150_v27 = vmul.f32 %v5672_v14, %v4183_v28 }
 0x299   : > { %v5679_v19 = vpop.eup %4206  ;;  %v3155_v21 = vadd.f32 %v3147_v55, %v3139_v56  ;;  %v3149_v40 = vmul.f32 %v5676_v30, %v4187_v48 }
 0x29a   : > { %v5683_v10 = vpop.eup %4208  ;;  %v3143_v61 = vmul.f32 %v5679_v19, %v3135_v1  ;;  %v3158_v8 = vadd.f32 %v3150_v27, %v3142_v25 }
 0x29b   : > { %v5686_v42 = vpop.eup %4210  ;;  %3965 = vmatprep.mubr.msk.f32.mxu1 %vm2244_vm2, %v3155_v21  ;;  %v3157_v20 = vadd.f32 %v3149_v40, %v3141_v9  ;;  %v3151_v41 = vmul.f32 %v5683_v10, %v4197_v44 }
 0x29c   : > { %v5691_v5 = vpop.eup %4212  ;;  %3966 = vmatmul.mubr.msk.f32.vlgmr.msra.gmra.mxu1 %vm2244_vm2, %v3156_v51  ;;  %v3152_v47 = vmul.f32 %v5686_v42, %v4191_v26 }
 0x29d   : > { %v4215_v46 = vpop.eup %4214  ;;  %3968 = vmatprep.mubr.msk.f32.mxu1 %vm2244_vm2, %v3157_v20  ;;  %v3159_v37 = vadd.f32 %v3151_v41, %v3143_v61  ;;  %v3153_v33 = vmul.f32 %v5691_v5, %v4199_v2 }
 0x29e   : > { %v5697_v6 = vpop.eup %4216  ;;  %v3138_v34 = vsub.f32 1.0, %v4215_v46  ;;  %v3160_v31 = vadd.f32 %v3152_v47, %v3144_v4 }
 0x29f   : > { %v5700_v36 = vpop.eup %4218  ;;  %v3145_v43 = vmul.f32 %v5697_v6, %v3137_v45 }
 0x2a0   : > { %3969 = vmatmul.mubr.msk.f32.gmra.mxu1 %vm2244_vm2, %v3158_v8  ;;  %v3154_v29 = vmul.f32 %v5700_v36, %v4215_v46  ;;  %v5707_v3 = vpop.eup %4220 }
 0x2a1   : > { %3971 = vmatprep.mubr.msk.f32.mxu1 %vm2244_vm2, %v3159_v37  ;;  %v3161_v12 = vadd.f32 %v3153_v33, %v3145_v43  ;;  %v3146_v18 = vmul.f32 %v5707_v3, %v3138_v34 }
 0x2a3   : > { %v3162_v23 = vadd.f32 %v3154_v29, %v3146_v18 }
 0x2a4   : > { %3972 = vmatmul.mubr.msk.f32.gmra.mxu1 %vm2244_vm2, %v3160_v31 }
 0x2a5   : > { %3974 = vmatprep.mubr.msk.f32.mxu1 %vm2244_vm2, %v3161_v12 }
 0x2a8   : > { %3975 = vmatmul.mubr.msk.f32.gmra.mxu1 %vm2244_vm2, %v3162_v23 }
 0x35c   : > { %v3967_v17 = vpop.f32.mrf.mxu1 }
 0x35d   : > { %v3272_v28 = vadd.f32 %v3967_v17, %v3745_v58 }
 0x35e   : > { %v3266_v16 = vpop.f32.mrf.mxu1 }
 0x35f   : > { %v3755_v52 = vmul.f32 -1.442695, %v3272_v28  ;;  %v3267_v53 = vadd.f32 %v3745_v58, %v3266_v16 }
 0x360   : > { %v3970_v48 = vpop.f32.mrf.mxu1 }
 0x361   : > { %4222 = vpow2.f32 %v3755_v52  ;;  %v3754_v26 = vmul.f32 -1.442695, %v3267_v53  ;;  %v3282_v7 = vadd.f32 %v3970_v48, %v3745_v58 }
 0x362   : > { %v3276_v54 = vpop.f32.mrf.mxu1 }
 0x363   : > { %4224 = vpow2.f32 %v3754_v26  ;;  %v3757_v44 = vmul.f32 -1.442695, %v3282_v7  ;;  %v3277_v15 = vadd.f32 %v3745_v58, %v3276_v54 }
 0x364   : > { %v3973_v2 = vpop.f32.mrf.mxu1 }
 0x365   : > { %4226 = vpow2.f32 %v3757_v44  ;;  %v3756_v32 = vmul.f32 -1.442695, %v3277_v15  ;;  %v3292_v57 = vadd.f32 %v3973_v2, %v3745_v58 }
 0x366   : > { %v3286_v56 = vpop.f32.mrf.mxu1 }
 0x367   : > { %4228 = vpow2.f32 %v3756_v32  ;;  %v3759_v55 = vmul.f32 -1.442695, %v3292_v57  ;;  %v3287_v1 = vadd.f32 %v3745_v58, %v3286_v56 }
 0x368   : > { %v3976_v22 = vpop.f32.mrf.mxu1 }
 0x369   : > { %4230 = vpow2.f32 %v3759_v55  ;;  %v3758_v38 = vmul.f32 -1.442695, %v3287_v1  ;;  %v3302_v21 = vadd.f32 %v3976_v22, %v3745_v58 }
 0x36a   : > { %v3296_v9 = vpop.f32.mrf.mxu1 }
 0x36b   : > { %4232 = vpow2.f32 %v3758_v38  ;;  %v3761_v40 = vmul.f32 -1.442695, %v3302_v21  ;;  %v3297_v51 = vadd.f32 %v3745_v58, %v3296_v9 }
 0x36d   : > { %4234 = vpow2.f32 %v3761_v40  ;;  %v3760_v27 = vmul.f32 -1.442695, %v3297_v51 }
 0x36e   : > { %v4223_v20 = vpop.eup %4222 }
 0x36f   : > { %v3330_v61 = vadd.f32 1.0, %v4223_v20  ;;  %4236 = vpow2.f32 %v3760_v27 }
 0x370   : > { %v4225_v41 = vpop.eup %4224 }
 0x371   : > { %4238 = vrcp.f32 %v3330_v61  ;;  %v3329_v45 = vadd.f32 1.0, %v4225_v41 }
 0x372   : > { %v4227_v25 = vpop.eup %4226 }
 0x373   : > { %4240 = vrcp.f32 %v3329_v45  ;;  %v3332_v35 = vadd.f32 1.0, %v4227_v25 }
 0x374   : > { %v4229_v46 = vpop.eup %4228 }
 0x375   : > { %4242 = vrcp.f32 %v3332_v35  ;;  %v3331_v37 = vadd.f32 1.0, %v4229_v46 }
 0x376   : > { %v4231_v33 = vpop.eup %4230 }
 0x377   : > { %4244 = vrcp.f32 %v3331_v37  ;;  %v3334_v8 = vadd.f32 1.0, %v4231_v33 }
 0x378   : > { %v4233_v47 = vpop.eup %4232 }
 0x379   : > { %4246 = vrcp.f32 %v3334_v8  ;;  %v3333_v43 = vadd.f32 1.0, %v4233_v47 }
 0x37a   : > { %v4235_v4 = vpop.eup %4234 }
 0x37b   : > { %4248 = vrcp.f32 %v3333_v43  ;;  %v3336_v34 = vadd.f32 1.0, %v4235_v4 }
 0x37c   : > { %v4237_v12 = vpop.eup %4236 }
 0x37d   : > { %4250 = vrcp.f32 %v3336_v34  ;;  %v3335_v31 = vadd.f32 1.0, %v4237_v12 }
 0x37e   : > { %v4239_v29 = vpop.eup %4238 }
 0x37f   : > { %v3354_v18 = vsub.f32 1.0, %v4239_v29  ;;  %4252 = vrcp.f32 %v3335_v31  ;;  %v3370_v16 = vmul.f32 %v4239_v29, %v5665_v11 }
 0x380   : > { %v4241_v23 = vpop.eup %4240 }
 0x381   : > { %v3353_v50 = vsub.f32 1.0, %v4241_v23  ;;  %v3362_v49 = vmul.f32 %v5655_v24, %v3354_v18  ;;  %v3369_v58 = vmul.f32 %v4241_v23, %v5668_v59 }
 0x382   : > { %v4243_v60 = vpop.eup %4242 }
 0x383   : > { %v3361_v62 = vmul.f32 %v5657_v13, %v3353_v50  ;;  %v3356_v17 = vsub.f32 1.0, %v4243_v60  ;;  %v3378_v26 = vadd.f32 %v3370_v16, %v3362_v49  ;;  %v3372_v59 = vmul.f32 %v4243_v60, %v5672_v14 }
 0x384   : > { %v4245_v28 = vpop.eup %4244 }
 0x385   : > { %v3377_v52 = vadd.f32 %v3369_v58, %v3361_v62  ;;  %v3355_v53 = vsub.f32 1.0, %v4245_v28  ;;  %v3364_v7 = vmul.f32 %v5659_v39, %v3356_v17  ;;  %v3371_v24 = vmul.f32 %v4245_v28, %v5676_v30 }
 0x386   : > { %v4247_v48 = vpop.eup %4246 }
 0x387   : > { %3985 = vmatprep.mubr.msk.f32.mxu0 %vm2244_vm2, %v3377_v52  ;;  %v3363_v54 = vmul.f32 %v5661_v0, %v3355_v53  ;;  %v3358_v44 = vsub.f32 1.0, %v4247_v48  ;;  %v3380_v32 = vadd.f32 %v3372_v59, %v3364_v7  ;;  %v3374_v55 = vmul.f32 %v4247_v48, %v5686_v42  ;;  %v3762_v42 = vld [vmem:[%s5783_s12] ss:$0 sm:$0xff] }
 0x388   : > { %v4249_v13 = vpop.eup %4248  ;;  %3986 = vmatmul.mubr.msk.f32.vlgmr.msra.gmra.mxu0 %vm2244_vm2, %v3378_v26 }
 0x389   : > { %v3379_v15 = vadd.f32 %v3371_v24, %v3363_v54  ;;  %v3357_v11 = vsub.f32 1.0, %v4249_v13  ;;  %v3366_v57 = vmul.f32 %v5663_v63, %v3358_v44  ;;  %v3373_v0 = vmul.f32 %v4249_v13, %v5683_v10 }
 0x38a   : > { %v4251_v2 = vpop.eup %4250 }
 0x38b   : > { %3988 = vmatprep.mubr.msk.f32.mxu0 %vm2244_vm2, %v3379_v15  ;;  %v3365_v39 = vmul.f32 %v5679_v19, %v3357_v11  ;;  %v3360_v56 = vsub.f32 1.0, %v4251_v2  ;;  %v3382_v22 = vadd.f32 %v3374_v55, %v3366_v57  ;;  %v3376_v10 = vmul.f32 %v4251_v2, %v5700_v36 }
 0x38c   : > { %v4253_v30 = vpop.eup %4252  ;;  %3989 = vmatmul.mubr.msk.f32.gmra.mxu0 %vm2244_vm2, %v3380_v32 }
 0x38d   : > { %v3381_v14 = vadd.f32 %v3373_v0, %v3365_v39  ;;  %v3359_v1 = vsub.f32 1.0, %v4253_v30  ;;  %v3368_v38 = vmul.f32 %v5707_v3, %v3360_v56  ;;  %v3375_v19 = vmul.f32 %v4253_v30, %v5691_v5 }
 0x38f   : > { %3991 = vmatprep.mubr.msk.f32.mxu0 %vm2244_vm2, %v3381_v14  ;;  %v3367_v63 = vmul.f32 %v5697_v6, %v3359_v1  ;;  %v3384_v9 = vadd.f32 %v3376_v10, %v3368_v38 }
 0x390   : > { %3992 = vmatmul.mubr.msk.f32.gmra.mxu0 %vm2244_vm2, %v3382_v22 }
 0x391   : > { %v3383_v21 = vadd.f32 %v3375_v19, %v3367_v63 }
 0x393   : > { %3994 = vmatprep.mubr.msk.f32.mxu0 %vm2244_vm2, %v3383_v21 }
 0x394   : > { %3995 = vmatmul.mubr.msk.f32.gmra.mxu0 %vm2244_vm2, %v3384_v9 }
 0x448   : > { %v3987_v5 = vpop.f32.mrf.mxu0 }
 0x449   : > { %v3492_v6 = vadd.f32 %v3987_v5, %v3762_v42 }
 0x44a   : > { %v3486_v3 = vpop.f32.mrf.mxu0 }
 0x44b   : > { %3527 = vst.msk [vmem:[%s442_s23 + $0x8] sm:$0xff] %vm3525_vm15, %v3492_v6  ;;  %v3487_v36 = vadd.f32 %v3762_v42, %v3486_v3 }
 0x44c   : > { %v3990_v40 = vpop.f32.mrf.mxu0 }
 0x44d   : > { %3526 = vst.msk [vmem:[%s442_s23] sm:$0xff] %vm3525_vm15, %v3487_v36  ;;  %v3502_v51 = vadd.f32 %v3990_v40, %v3762_v42 }
 0x44e   : > { %v3496_v27 = vpop.f32.mrf.mxu0 }
 0x44f   : > { %3529 = vst.msk [vmem:[%s442_s23 + $0x18] sm:$0xff] %vm3525_vm15, %v3502_v51  ;;  %v3497_v20 = vadd.f32 %v3762_v42, %v3496_v27 }
 0x450   : > { %v3993_v61 = vpop.f32.mrf.mxu0 }
 0x451   : > { %3528 = vst.msk [vmem:[%s442_s23 + $0x10] sm:$0xff] %vm3525_vm15, %v3497_v20  ;;  %v3512_v41 = vadd.f32 %v3993_v61, %v3762_v42 }
 0x452   : > { %v3506_v45 = vpop.f32.mrf.mxu0 }
 0x453   : > { %3531 = vst.msk [vmem:[%s442_s23 + $0x28] sm:$0xff] %vm3525_vm15, %v3512_v41  ;;  %v3507_v25 = vadd.f32 %v3762_v42, %v3506_v45 }
 0x454   : > { %v3996_v35 = vpop.f32.mrf.mxu0 }
 0x455   : > { %3530 = vst.msk [vmem:[%s442_s23 + $0x20] sm:$0xff] %vm3525_vm15, %v3507_v25  ;;  %v3522_v46 = vadd.f32 %v3996_v35, %v3762_v42 }
 0x456   : > { %v3516_v37 = vpop.f32.mrf.mxu0 }
 0x457   : > { %3533 = vst.msk [vmem:[%s442_s23 + $0x38] sm:$0xff] %vm3525_vm15, %v3522_v46  ;;  %v3517_v33 = vadd.f32 %v3762_v42, %v3516_v37 }
 0x459   : > { %3532 = vst.msk [vmem:[%s442_s23 + $0x30] sm:$0xff] %vm3525_vm15, %v3517_v33 }
 0x45a PF: > { %s23_s25 = sadd.s32 1, %s4261_s25  }
 0x45b   : > { %p20_p4 = scmp.ge.s32.totalorder %s23_s25, 4  }
 0x45d   :  { %22 = sbr.rel (!%p20_p4) target bundleno = 1 (0x1), region = 104 }

</bundles_post_ra>
